<compile_context>
chip_gen: v6e
topology: v6e:2x2x1
jax: 0.10.0
libtpu: 0.0.40
codegen_flags: <defaults>
</compile_context>

<pallas_src>
import functools

import jax
import jax.numpy as jnp
import numpy as np
from jax import lax
from jax.experimental import pallas as pl
from jax.experimental.pallas import tpu as pltpu


def _life_cmd_kernel(
    x_ref,       # (Bb, D)      f32
    ew1_ref,     # (D, H)       weight dtype (bf16)
    eb1_ref,     # (1, H)       f32
    ew2_ref,     # (H, H)       weight dtype
    eb2_ref,     # (1, H)       f32
    wih0_ref,    # (H, 4H)      weight dtype (layer-0 input weights, gate order i,f,o,g)
    whh0_ref,    # (H, 4H)      weight dtype (layer-0 recurrent weights)
    wcat1_ref,   # (2H, 4H)     weight dtype ([w_ih[1]; w_hh[1]])
    wcat2_ref,   # (2H, 4H)     weight dtype ([w_ih[2]; w_hh[2]])
    bg_ref,      # (3, 1, 4H)   f32 (b_ih + b_hh, gate-reordered)
    how_ref,     # (H, Vp)      weight dtype (fused wv @ wo @ out_w, V padded to 128)
    hob_ref,     # (1, Vp)      f32
    out_ref,     # (Tc, Bb, Vp) f32
    g0_ref,      # (Bb, 4H)     f32 scratch: hoisted layer-0 input-gate contribution
    h_ref,       # (3, Bb, H)   weight-dtype scratch: h carries
    c_ref,       # (3, Bb, H)   f32 scratch: c carries
):
    H = whh0_ref.shape[0]
    Tc = out_ref.shape[0]
    wdt = whh0_ref.dtype
    tc = pl.program_id(1)

    def mm(a, w):  # bf16 x bf16 MXU matmul, f32 accumulation
        return jnp.dot(a.astype(wdt), w, preferred_element_type=jnp.float32)

    @pl.when(tc == 0)
    def _init():
        # Encoder (Dropout == identity in eval) + hoisted, time-invariant layer-0
        # input-gate matmul (the LSTM input is `encoded` on every step); carries reset
        # once per batch block.
        e1 = jnp.maximum(mm(x_ref[...], ew1_ref[...]) + eb1_ref[...], 0.0)
        enc = jnp.maximum(mm(e1, ew2_ref[...]) + eb2_ref[...], 0.0)
        g0_ref[...] = mm(enc, wih0_ref[...]) + bg_ref[0]
        h_ref[...] = jnp.zeros_like(h_ref)
        c_ref[...] = jnp.zeros_like(c_ref)

    g0 = g0_ref[...]          # (Bb, 4H), loaded once per chunk
    bg1 = bg_ref[1]
    bg2 = bg_ref[2]

    def lstm_cell(gates, c_prev):
        # gate order (i, f, o, g): one contiguous sigmoid slab, tanh on the tail.
        sig = jax.nn.sigmoid(gates[:, :3 * H])
        g_g = jnp.tanh(gates[:, 3 * H:])
        c_new = sig[:, H:2 * H] * c_prev + sig[:, :H] * g_g
        h_new = sig[:, 2 * H:3 * H] * jnp.tanh(c_new)
        return h_new.astype(wdt), c_new        # h carried in the MXU input dtype

    def step(t, carry):
        h0, c0, h1, c1, h2, c2 = carry
        # layer 0: time-invariant input contribution hoisted into g0
        h0, c0 = lstm_cell(g0 + mm(h0, whh0_ref[...]), c0)
        # layers 1/2: input + recurrent matmuls fused into one (Bb,2H)@(2H,4H) MXU call
        h1, c1 = lstm_cell(mm(jnp.concatenate([h0, h1], axis=1), wcat1_ref[...]) + bg1, c1)
        h2, c2 = lstm_cell(mm(jnp.concatenate([h1, h2], axis=1), wcat2_ref[...]) + bg2, c2)
        # fused attention (seq_len==1 -> softmax==1 -> out_proj∘v_proj) + vocab head
        out_ref[t] = (mm(h2, how_ref[...]) + hob_ref[...]).astype(out_ref.dtype)
        return (h0, c0, h1, c1, h2, c2)

    carry = (h_ref[0], c_ref[0], h_ref[1], c_ref[1], h_ref[2], c_ref[2])
    # Fully unrolled chunk loop (T_chunk <= 8): lets the head matmul of step t overlap
    # the recurrent matmuls of step t+1, keeping the MXU slot busy.
    carry = lax.fori_loop(0, Tc, step, carry, unroll=True)
    h0, c0, h1, c1, h2, c2 = carry
    h_ref[0], c_ref[0] = h0, c0
    h_ref[1], c_ref[1] = h1, c1
    h_ref[2], c_ref[2] = h2, c2


def _tpu_generation_info():
    """Returns (vmem_capacity_bytes, is_v7x_like). Conservative fallback on failure."""
    try:
        info = pltpu.get_tpu_info()
        vmem = int(info.vmem_capacity_bytes)
        # v7x: 64 MiB VMEM per TensorCore, 2 TCs/chip.  v5e/v6e: 128 MiB, 1 TC.
        return vmem, vmem <= 96 * 1024 * 1024
    except Exception:
        return 128 * 1024 * 1024, False


def _pick_t_chunk(T, max_chunk=8):
    for d in range(min(T, max_chunk), 0, -1):
        if T % d == 0:
            return d
    return 1


def life_command_generator_pallas(x, params, max_commands, *,
                                  weights_dtype=jnp.bfloat16,
                                  batch_block=None,
                                  t_chunk=None,
                                  single_buffer_weights=None):
    """Pallas forward of LifeCommandGenerator (eval mode). Returns (B, T, vocab)."""
    f32 = jnp.float32
    B, D = x.shape
    H = params["enc_w1"].shape[1]
    V = params["out_w"].shape[1]
    T = int(max_commands)

    vmem_cap, is_v7x_like = _tpu_generation_info()

    # ---- algebraic fusion (f32), then cast weight matrices to bf16 ----
    # NOTE: W_head is fused in f32 then cast, a deliberate tiny numerics difference vs
    # quantizing each factor first (well inside the 2e-2 tolerance).
    w_head = (params["wv"] @ params["wo"]) @ params["out_w"]                      # (H, V)
    b_head = (params["bv"] @ params["wo"] + params["bo"]) @ params["out_w"] \
             + params["out_b"]                                                    # (1, V)

    # pad vocab to a multiple of 128 (lane-dense logit stores, full MXU N tiles)
    V_pad = -(-V // 128) * 128
    if V_pad != V:
        w_head = jnp.pad(w_head, ((0, 0), (0, V_pad - V)))
        b_head = jnp.pad(b_head, ((0, 0), (0, V_pad - V)))

    def reorder_gates(w):
        # PyTorch gate order (i,f,g,o) -> (i,f,o,g) along the 4H axis
        return jnp.concatenate([w[..., :2 * H], w[..., 3 * H:], w[..., 2 * H:3 * H]],
                               axis=-1)

    b_gates = reorder_gates(params["b_ih"] + params["b_hh"])                      # (3,1,4H)
    w_ih = reorder_gates(params["w_ih"])                                          # (3,H,4H)
    w_hh = reorder_gates(params["w_hh"])                                          # (3,H,4H)
    # fuse layers 1/2 input + recurrent matmuls into one K-concatenated matrix each
    w_cat1 = jnp.concatenate([w_ih[1], w_hh[1]], axis=0)                          # (2H,4H)
    w_cat2 = jnp.concatenate([w_ih[2], w_hh[2]], axis=0)                          # (2H,4H)

    wc = lambda a: a.astype(weights_dtype)

    # ---- pad batch to a multiple of 8 (f32 sublane); padded rows are sliced off ----
    B_pad = max(8, -(-B // 8) * 8)
    x_p = x.astype(f32)
    if B_pad != B:
        x_p = jnp.pad(x_p, ((0, B_pad - B), (0, 0)))

    if batch_block is None:
        if is_v7x_like and B_pad % 16 == 0 and B_pad >= 16:
            batch_block = B_pad // 2   # shard the "parallel" axis across v7x's 2 TCs
        else:
            batch_block = B_pad        # v5e/v6e have 1 TC: keep one fat block
    assert B_pad % batch_block == 0 and batch_block % 8 == 0
    n_blocks = B_pad // batch_block

    if t_chunk is None:
        t_chunk = _pick_t_chunk(T)
    assert T % t_chunk == 0
    n_tchunks = T // t_chunk

    # single-buffer the grid-invariant weights on VMEM-tight v7x-like chips
    if single_buffer_weights is None:
        single_buffer_weights = is_v7x_like
    if single_buffer_weights:
        try:  # tolerate older BlockSpec signatures
            _ = pl.BlockSpec((8, 128), lambda i, j: (0, 0), pipeline_mode=pl.Buffered(1))
        except Exception:
            single_buffer_weights = False

    args = [
        x_p,
        wc(params["enc_w1"]), params["enc_b1"].astype(f32),
        wc(params["enc_w2"]), params["enc_b2"].astype(f32),
        wc(w_ih[0]), wc(w_hh[0]),
        wc(w_cat1), wc(w_cat2),
        b_gates.astype(f32),
        wc(w_head), b_head.astype(f32),
    ]

    def _const_spec(arr):
        nd = arr.ndim
        idx = lambda b, t, _nd=nd: (0,) * _nd
        if single_buffer_weights:
            return pl.BlockSpec(arr.shape, idx, pipeline_mode=pl.Buffered(1))
        return pl.BlockSpec(arr.shape, idx)

    in_specs = [pl.BlockSpec((batch_block, D), lambda b, t: (b, 0))] \
               + [_const_spec(a) for a in args[1:]]
    # output streamed over T in chunks (resident tile is only (t_chunk, Bb, V_pad))
    out_specs = pl.BlockSpec((t_chunk, batch_block, V_pad), lambda b, t: (t, b, 0))

    grid_spec = pltpu.PrefetchScalarGridSpec(
        num_scalar_prefetch=0,
        grid=(n_blocks, n_tchunks),
        in_specs=in_specs,
        out_specs=out_specs,
        scratch_shapes=[
            pltpu.VMEM((batch_block, 4 * H), f32),            # hoisted layer-0 gates
            pltpu.VMEM((3, batch_block, H), weights_dtype),   # h carries (bf16)
            pltpu.VMEM((3, batch_block, H), f32),             # c carries
        ],
    )

    # generation-aware VMEM limit: ~110 MiB on 128-MiB chips, ~56 MiB on v7x
    vmem_limit = int(min(vmem_cap * 7 // 8, 110 * 1024 * 1024))

    # TODO(synk): optionally emit bf16 logits on v7x to halve output VMEM/HBM traffic.
    out_tbv = pl.pallas_call(
        _life_cmd_kernel,
        out_shape=jax.ShapeDtypeStruct((T, B_pad, V_pad), f32),
        grid_spec=grid_spec,
        compiler_params=pltpu.CompilerParams(
            dimension_semantics=("parallel", "arbitrary"),
            vmem_limit_bytes=vmem_limit,
        ),
    )(*args)

    # PyTorch contract is (B, T, vocab); drop batch/vocab padding and transpose.
    return jnp.transpose(out_tbv[:, :B, :V], (1, 0, 2))


def life_command_generator_ref(x, p, max_commands, weights_dtype=jnp.bfloat16):
    """Pure-JAX reference with the original (unfused) PyTorch math.

    Weight matrices are quantized to `weights_dtype` (then upcast to f32) to mirror the
    kernel's storage precision; all math and activations are f32.
    """
    q = lambda a: a.astype(weights_dtype).astype(jnp.float32)
    B = x.shape[0]
    H = p["enc_w1"].shape[1]
    enc = jax.nn.relu(x @ q(p["enc_w1"]) + p["enc_b1"][0])
    enc = jax.nn.relu(enc @ q(p["enc_w2"]) + p["enc_b2"][0])
    h = [jnp.zeros((B, H), jnp.float32) for _ in range(3)]
    c = [jnp.zeros((B, H), jnp.float32) for _ in range(3)]
    outs = []
    for _ in range(max_commands):
        layer_in = enc
        for l in range(3):
            gates = (layer_in @ q(p["w_ih"][l]) + p["b_ih"][l, 0]
                     + h[l] @ q(p["w_hh"][l]) + p["b_hh"][l, 0])
            i_g = jax.nn.sigmoid(gates[:, 0 * H:1 * H])
            f_g = jax.nn.sigmoid(gates[:, 1 * H:2 * H])
            g_g = jnp.tanh(gates[:, 2 * H:3 * H])
            o_g = jax.nn.sigmoid(gates[:, 3 * H:4 * H])
            c[l] = f_g * c[l] + i_g * g_g
            h[l] = o_g * jnp.tanh(c[l])
            layer_in = h[l]
        # MultiheadAttention over a length-1 sequence == out_proj(v_proj(x))
        v = layer_in @ q(p["wv"]) + p["bv"][0]
        a = v @ q(p["wo"]) + p["bo"][0]
        outs.append(a @ q(p["out_w"]) + p["out_b"][0])
    return jnp.stack(outs, axis=1)


def make_params(key, input_dim, hidden_dim, vocab):
    ks = jax.random.split(key, 14)
    s = lambda fan_in: 1.0 / np.sqrt(fan_in)
    H = hidden_dim
    return {
        "enc_w1": jax.random.normal(ks[0], (input_dim, H), jnp.float32) * s(input_dim),
        "enc_b1": jax.random.normal(ks[1], (1, H), jnp.float32) * 0.01,
        "enc_w2": jax.random.normal(ks[2], (H, H), jnp.float32) * s(H),
        "enc_b2": jax.random.normal(ks[3], (1, H), jnp.float32) * 0.01,
        # LSTM: 3 layers, PyTorch gate order (i, f, g, o); weights pre-transposed (H, 4H)
        "w_ih": jax.random.normal(ks[4], (3, H, 4 * H), jnp.float32) * s(H),
        "w_hh": jax.random.normal(ks[5], (3, H, 4 * H), jnp.float32) * s(H),
        "b_ih": jax.random.normal(ks[6], (3, 1, 4 * H), jnp.float32) * 0.01,
        "b_hh": jax.random.normal(ks[7], (3, 1, 4 * H), jnp.float32) * 0.01,
        # MultiheadAttention: only the V-projection slice of in_proj and out_proj matter
        # (seq_len == 1 -> softmax == 1); num_heads=8 has no numerical effect here.
        "wv": jax.random.normal(ks[8], (H, H), jnp.float32) * s(H),
        "bv": jax.random.normal(ks[9], (1, H), jnp.float32) * 0.01,
        "wo": jax.random.normal(ks[10], (H, H), jnp.float32) * s(H),
        "bo": jax.random.normal(ks[11], (1, H), jnp.float32) * 0.01,
        "out_w": jax.random.normal(ks[12], (H, vocab), jnp.float32) * s(H),
        "out_b": jax.random.normal(ks[13], (1, vocab), jnp.float32) * 0.01,
    }


if __name__ == "__main__":
    # Small shapes consistent with the module (scaled-down from 768/512/2000/30)
    BATCH = 2
    INPUT_DIM = 64
    HIDDEN_DIM = 32
    VOCAB = 128
    MAX_COMMANDS = 4

    key = jax.random.PRNGKey(0)
    k_x, k_p = jax.random.split(key)
    x = jax.random.normal(k_x, (BATCH, INPUT_DIM), jnp.float32)
    params = make_params(k_p, INPUT_DIM, HIDDEN_DIM, VOCAB)

    run = jax.jit(functools.partial(life_command_generator_pallas,
                                    max_commands=MAX_COMMANDS))
    out = jax.block_until_ready(run(x, params))

    ref = life_command_generator_ref(x, params, MAX_COMMANDS)
    assert out.shape == (BATCH, MAX_COMMANDS, VOCAB), out.shape
    np.testing.assert_allclose(np.asarray(out), np.asarray(ref), rtol=2e-2, atol=2e-2)

    print("KERNEL_OK")
</pallas_src>

<mosaic_0001>
module attributes {stable_mosaic.version = 11 : i64} {
  func.func @_life_cmd_kernel(%arg0: i32, %arg1: i32, %arg2: memref<8x64xf32, #tpu.memory_space<vmem>>, %arg3: memref<64x32xbf16, #tpu.memory_space<vmem>>, %arg4: memref<1x32xf32, #tpu.memory_space<vmem>>, %arg5: memref<32x32xbf16, #tpu.memory_space<vmem>>, %arg6: memref<1x32xf32, #tpu.memory_space<vmem>>, %arg7: memref<32x128xbf16, #tpu.memory_space<vmem>>, %arg8: memref<32x128xbf16, #tpu.memory_space<vmem>>, %arg9: memref<64x128xbf16, #tpu.memory_space<vmem>>, %arg10: memref<64x128xbf16, #tpu.memory_space<vmem>>, %arg11: memref<3x1x128xf32, #tpu.memory_space<vmem>>, %arg12: memref<32x128xbf16, #tpu.memory_space<vmem>>, %arg13: memref<1x128xf32, #tpu.memory_space<vmem>>, %arg14: memref<4x8x128xf32, #tpu.memory_space<vmem>>, %arg15: memref<8x128xf32, #tpu.memory_space<vmem>>, %arg16: memref<3x8x32xbf16, #tpu.memory_space<vmem>>, %arg17: memref<3x8x32xf32, #tpu.memory_space<vmem>>) attributes {dimension_semantics = [#tpu.dimension_semantics<parallel>, #tpu.dimension_semantics<arbitrary>], iteration_bounds = array<i64: 1, 1>, scalar_prefetch = 0 : i64, scratch_operands = 3 : i64, tpu.core_type = #tpu.core_type<tc>, window_params = [{transform_indices = @transform_0, window_bounds = array<i64: 8, 64>}, {pipeline_mode = #tpu.pipeline_mode<synchronous>, transform_indices = @transform_1, window_bounds = array<i64: 64, 32>}, {pipeline_mode = #tpu.pipeline_mode<synchronous>, transform_indices = @transform_2, window_bounds = array<i64: 1, 32>}, {pipeline_mode = #tpu.pipeline_mode<synchronous>, transform_indices = @transform_3, window_bounds = array<i64: 32, 32>}, {pipeline_mode = #tpu.pipeline_mode<synchronous>, transform_indices = @transform_4, window_bounds = array<i64: 1, 32>}, {pipeline_mode = #tpu.pipeline_mode<synchronous>, transform_indices = @transform_5, window_bounds = array<i64: 32, 128>}, {pipeline_mode = #tpu.pipeline_mode<synchronous>, transform_indices = @transform_6, window_bounds = array<i64: 32, 128>}, {pipeline_mode = #tpu.pipeline_mode<synchronous>, transform_indices = @transform_7, window_bounds = array<i64: 64, 128>}, {pipeline_mode = #tpu.pipeline_mode<synchronous>, transform_indices = @transform_8, window_bounds = array<i64: 64, 128>}, {pipeline_mode = #tpu.pipeline_mode<synchronous>, transform_indices = @transform_9, window_bounds = array<i64: 3, 1, 128>}, {pipeline_mode = #tpu.pipeline_mode<synchronous>, transform_indices = @transform_10, window_bounds = array<i64: 32, 128>}, {pipeline_mode = #tpu.pipeline_mode<synchronous>, transform_indices = @transform_11, window_bounds = array<i64: 1, 128>}, {transform_indices = @transform_12, window_bounds = array<i64: 4, 8, 128>}]} {
    %c0_i32 = arith.constant 0 : i32
    %0 = arith.cmpi eq, %arg1, %c0_i32 : i32
    %1 = arith.extui %0 : i1 to i32
    %c0_i32_0 = arith.constant 0 : i32
    %2 = arith.cmpi ne, %1, %c0_i32_0 : i32
    scf.if %2 {
      %c0_118 = arith.constant 0 : index
      %c0_119 = arith.constant 0 : index
      %330 = vector.load %arg2[%c0_118, %c0_119] : memref<8x64xf32, #tpu.memory_space<vmem>>, vector<8x64xf32>
      %c0_120 = arith.constant 0 : index
      %c0_121 = arith.constant 0 : index
      %331 = vector.load %arg3[%c0_120, %c0_121] : memref<64x32xbf16, #tpu.memory_space<vmem>>, vector<64x32xbf16>
      %332 = arith.truncf %330 : vector<8x64xf32> to vector<8x64xbf16>
      %cst_122 = arith.constant dense<0.000000e+00> : vector<8x32xf32>
      %333 = tpu.matmul %332, %331, %cst_122 {dimension_numbers = #tpu.dot_dimension_numbers<[1], [0], [0], [1], [0, 0, 1, 1], [], []>} : vector<8x64xbf16>, vector<64x32xbf16>, vector<8x32xf32> -> vector<8x32xf32>
      %c0_123 = arith.constant 0 : index
      %c0_124 = arith.constant 0 : index
      %334 = vector.load %arg4[%c0_123, %c0_124] : memref<1x32xf32, #tpu.memory_space<vmem>>, vector<1x32xf32>
      %335 = vector.broadcast %334 : vector<1x32xf32> to vector<8x32xf32>
      %336 = arith.addf %333, %335 : vector<8x32xf32>
      %cst_125 = arith.constant 0.000000e+00 : f32
      %337 = vector.broadcast %cst_125 : f32 to vector<8x32xf32>
      %338 = arith.maximumf %336, %337 : vector<8x32xf32>
      %c0_126 = arith.constant 0 : index
      %c0_127 = arith.constant 0 : index
      %339 = vector.load %arg5[%c0_126, %c0_127] : memref<32x32xbf16, #tpu.memory_space<vmem>>, vector<32x32xbf16>
      %340 = arith.truncf %338 : vector<8x32xf32> to vector<8x32xbf16>
      %cst_128 = arith.constant dense<0.000000e+00> : vector<8x32xf32>
      %341 = tpu.matmul %340, %339, %cst_128 {dimension_numbers = #tpu.dot_dimension_numbers<[1], [0], [0], [1], [0, 0, 1, 1], [], []>} : vector<8x32xbf16>, vector<32x32xbf16>, vector<8x32xf32> -> vector<8x32xf32>
      %c0_129 = arith.constant 0 : index
      %c0_130 = arith.constant 0 : index
      %342 = vector.load %arg6[%c0_129, %c0_130] : memref<1x32xf32, #tpu.memory_space<vmem>>, vector<1x32xf32>
      %343 = vector.broadcast %342 : vector<1x32xf32> to vector<8x32xf32>
      %344 = arith.addf %341, %343 : vector<8x32xf32>
      %cst_131 = arith.constant 0.000000e+00 : f32
      %345 = vector.broadcast %cst_131 : f32 to vector<8x32xf32>
      %346 = arith.maximumf %344, %345 : vector<8x32xf32>
      %c0_132 = arith.constant 0 : index
      %c0_133 = arith.constant 0 : index
      %347 = vector.load %arg7[%c0_132, %c0_133] : memref<32x128xbf16, #tpu.memory_space<vmem>>, vector<32x128xbf16>
      %348 = arith.truncf %346 : vector<8x32xf32> to vector<8x32xbf16>
      %cst_134 = arith.constant dense<0.000000e+00> : vector<8x128xf32>
      %349 = tpu.matmul %348, %347, %cst_134 {dimension_numbers = #tpu.dot_dimension_numbers<[1], [0], [0], [1], [0, 0, 1, 1], [], []>} : vector<8x32xbf16>, vector<32x128xbf16>, vector<8x128xf32> -> vector<8x128xf32>
      %c0_135 = arith.constant 0 : index
      %c0_136 = arith.constant 0 : index
      %c0_137 = arith.constant 0 : index
      %350 = vector.load %arg11[%c0_135, %c0_136, %c0_137] : memref<3x1x128xf32, #tpu.memory_space<vmem>>, vector<1x1x128xf32>
      %351 = vector.shape_cast %350 : vector<1x1x128xf32> to vector<1x128xf32>
      %352 = vector.broadcast %351 : vector<1x128xf32> to vector<8x128xf32>
      %353 = arith.addf %349, %352 : vector<8x128xf32>
      %c0_138 = arith.constant 0 : index
      %c0_139 = arith.constant 0 : index
      %354 = vector.load %arg15[%c0_138, %c0_139] : memref<8x128xf32, #tpu.memory_space<vmem>>, vector<8x128xf32>
      tpu.vector_store %arg15[%c0_138, %c0_139], %353 {strides = array<i32>} : memref<8x128xf32, #tpu.memory_space<vmem>>, vector<8x128xf32>,
      %cst_140 = arith.constant 0.000000e+00 : bf16
      %355 = vector.broadcast %cst_140 : bf16 to vector<3x8x32xbf16>
      %c0_141 = arith.constant 0 : index
      %c0_142 = arith.constant 0 : index
      %c0_143 = arith.constant 0 : index
      %356 = vector.load %arg16[%c0_141, %c0_142, %c0_143] : memref<3x8x32xbf16, #tpu.memory_space<vmem>>, vector<3x8x32xbf16>
      tpu.vector_store %arg16[%c0_141, %c0_142, %c0_143], %355 {strides = array<i32>} : memref<3x8x32xbf16, #tpu.memory_space<vmem>>, vector<3x8x32xbf16>,
      %cst_144 = arith.constant 0.000000e+00 : f32
      %357 = vector.broadcast %cst_144 : f32 to vector<3x8x32xf32>
      %c0_145 = arith.constant 0 : index
      %c0_146 = arith.constant 0 : index
      %c0_147 = arith.constant 0 : index
      %358 = vector.load %arg17[%c0_145, %c0_146, %c0_147] : memref<3x8x32xf32, #tpu.memory_space<vmem>>, vector<3x8x32xf32>
      tpu.vector_store %arg17[%c0_145, %c0_146, %c0_147], %357 {strides = array<i32>} : memref<3x8x32xf32, #tpu.memory_space<vmem>>, vector<3x8x32xf32>,
    } else {
    }
    %c0 = arith.constant 0 : index
    %c0_1 = arith.constant 0 : index
    %3 = vector.load %arg15[%c0, %c0_1] : memref<8x128xf32, #tpu.memory_space<vmem>>, vector<8x128xf32>
    %c1 = arith.constant 1 : index
    %c0_2 = arith.constant 0 : index
    %c0_3 = arith.constant 0 : index
    %4 = vector.load %arg11[%c1, %c0_2, %c0_3] : memref<3x1x128xf32, #tpu.memory_space<vmem>>, vector<1x1x128xf32>
    %5 = vector.shape_cast %4 : vector<1x1x128xf32> to vector<1x128xf32>
    %c2 = arith.constant 2 : index
    %c0_4 = arith.constant 0 : index
    %c0_5 = arith.constant 0 : index
    %6 = vector.load %arg11[%c2, %c0_4, %c0_5] : memref<3x1x128xf32, #tpu.memory_space<vmem>>, vector<1x1x128xf32>
    %7 = vector.shape_cast %6 : vector<1x1x128xf32> to vector<1x128xf32>
    %c0_6 = arith.constant 0 : index
    %c0_7 = arith.constant 0 : index
    %c0_8 = arith.constant 0 : index
    %8 = vector.load %arg16[%c0_6, %c0_7, %c0_8] : memref<3x8x32xbf16, #tpu.memory_space<vmem>>, vector<1x8x32xbf16>
    %9 = vector.shape_cast %8 : vector<1x8x32xbf16> to vector<8x32xbf16>
    %c0_9 = arith.constant 0 : index
    %c0_10 = arith.constant 0 : index
    %c0_11 = arith.constant 0 : index
    %10 = vector.load %arg17[%c0_9, %c0_10, %c0_11] : memref<3x8x32xf32, #tpu.memory_space<vmem>>, vector<1x8x32xf32>
    %11 = vector.shape_cast %10 : vector<1x8x32xf32> to vector<8x32xf32>
    %c1_12 = arith.constant 1 : index
    %c0_13 = arith.constant 0 : index
    %c0_14 = arith.constant 0 : index
    %12 = vector.load %arg16[%c1_12, %c0_13, %c0_14] : memref<3x8x32xbf16, #tpu.memory_space<vmem>>, vector<1x8x32xbf16>
    %13 = vector.shape_cast %12 : vector<1x8x32xbf16> to vector<8x32xbf16>
    %c1_15 = arith.constant 1 : index
    %c0_16 = arith.constant 0 : index
    %c0_17 = arith.constant 0 : index
    %14 = vector.load %arg17[%c1_15, %c0_16, %c0_17] : memref<3x8x32xf32, #tpu.memory_space<vmem>>, vector<1x8x32xf32>
    %15 = vector.shape_cast %14 : vector<1x8x32xf32> to vector<8x32xf32>
    %c2_18 = arith.constant 2 : index
    %c0_19 = arith.constant 0 : index
    %c0_20 = arith.constant 0 : index
    %16 = vector.load %arg16[%c2_18, %c0_19, %c0_20] : memref<3x8x32xbf16, #tpu.memory_space<vmem>>, vector<1x8x32xbf16>
    %17 = vector.shape_cast %16 : vector<1x8x32xbf16> to vector<8x32xbf16>
    %c2_21 = arith.constant 2 : index
    %c0_22 = arith.constant 0 : index
    %c0_23 = arith.constant 0 : index
    %18 = vector.load %arg17[%c2_21, %c0_22, %c0_23] : memref<3x8x32xf32, #tpu.memory_space<vmem>>, vector<1x8x32xf32>
    %19 = vector.shape_cast %18 : vector<1x8x32xf32> to vector<8x32xf32>
    %c0_i32_24 = arith.constant 0 : i32
    %c0_25 = arith.constant 0 : index
    %c0_26 = arith.constant 0 : index
    %20 = vector.load %arg8[%c0_25, %c0_26] : memref<32x128xbf16, #tpu.memory_space<vmem>>, vector<32x128xbf16>
    %cst = arith.constant dense<0.000000e+00> : vector<8x128xf32>
    %21 = tpu.matmul %9, %20, %cst {dimension_numbers = #tpu.dot_dimension_numbers<[1], [0], [0], [1], [0, 0, 1, 1], [], []>} : vector<8x32xbf16>, vector<32x128xbf16>, vector<8x128xf32> -> vector<8x128xf32>
    %22 = arith.addf %3, %21 : vector<8x128xf32>
    %23 = vector.extract_strided_slice %22 {offsets = [0, 0], sizes = [8, 96], strides = [1, 1]} : vector<8x128xf32> to vector<8x96xf32>
    %24 = arith.negf %23 : vector<8x96xf32>
    %25 = math.exp %24 : vector<8x96xf32>
    %cst_27 = arith.constant 1.000000e+00 : f32
    %26 = vector.broadcast %cst_27 : f32 to vector<8x96xf32>
    %27 = arith.addf %26, %25 : vector<8x96xf32>
    %28 = arith.divf %26, %27 : vector<8x96xf32>
    %29 = vector.extract_strided_slice %22 {offsets = [0, 96], sizes = [8, 32], strides = [1, 1]} : vector<8x128xf32> to vector<8x32xf32>
    %30 = math.tanh %29 : vector<8x32xf32>
    %31 = vector.extract_strided_slice %28 {offsets = [0, 32], sizes = [8, 32], strides = [1, 1]} : vector<8x96xf32> to vector<8x32xf32>
    %32 = arith.mulf %31, %11 : vector<8x32xf32>
    %33 = vector.extract_strided_slice %28 {offsets = [0, 0], sizes = [8, 32], strides = [1, 1]} : vector<8x96xf32> to vector<8x32xf32>
    %34 = arith.mulf %33, %30 : vector<8x32xf32>
    %35 = arith.addf %32, %34 : vector<8x32xf32>
    %36 = vector.extract_strided_slice %28 {offsets = [0, 64], sizes = [8, 32], strides = [1, 1]} : vector<8x96xf32> to vector<8x32xf32>
    %37 = math.tanh %35 : vector<8x32xf32>
    %38 = arith.mulf %36, %37 : vector<8x32xf32>
    %39 = arith.truncf %38 : vector<8x32xf32> to vector<8x32xbf16>
    %40 = tpu.concatenate %39, %13 in 1 : vector<8x32xbf16>, vector<8x32xbf16> -> vector<8x64xbf16>
    %c0_28 = arith.constant 0 : index
    %c0_29 = arith.constant 0 : index
    %41 = vector.load %arg9[%c0_28, %c0_29] : memref<64x128xbf16, #tpu.memory_space<vmem>>, vector<64x128xbf16>
    %cst_30 = arith.constant dense<0.000000e+00> : vector<8x128xf32>
    %42 = tpu.matmul %40, %41, %cst_30 {dimension_numbers = #tpu.dot_dimension_numbers<[1], [0], [0], [1], [0, 0, 1, 1], [], []>} : vector<8x64xbf16>, vector<64x128xbf16>, vector<8x128xf32> -> vector<8x128xf32>
    %43 = vector.broadcast %5 : vector<1x128xf32> to vector<8x128xf32>
    %44 = arith.addf %42, %43 : vector<8x128xf32>
    %45 = vector.extract_strided_slice %44 {offsets = [0, 0], sizes = [8, 96], strides = [1, 1]} : vector<8x128xf32> to vector<8x96xf32>
    %46 = arith.negf %45 : vector<8x96xf32>
    %47 = math.exp %46 : vector<8x96xf32>
    %cst_31 = arith.constant 1.000000e+00 : f32
    %48 = vector.broadcast %cst_31 : f32 to vector<8x96xf32>
    %49 = arith.addf %48, %47 : vector<8x96xf32>
    %50 = arith.divf %48, %49 : vector<8x96xf32>
    %51 = vector.extract_strided_slice %44 {offsets = [0, 96], sizes = [8, 32], strides = [1, 1]} : vector<8x128xf32> to vector<8x32xf32>
    %52 = math.tanh %51 : vector<8x32xf32>
    %53 = vector.extract_strided_slice %50 {offsets = [0, 32], sizes = [8, 32], strides = [1, 1]} : vector<8x96xf32> to vector<8x32xf32>
    %54 = arith.mulf %53, %15 : vector<8x32xf32>
    %55 = vector.extract_strided_slice %50 {offsets = [0, 0], sizes = [8, 32], strides = [1, 1]} : vector<8x96xf32> to vector<8x32xf32>
    %56 = arith.mulf %55, %52 : vector<8x32xf32>
    %57 = arith.addf %54, %56 : vector<8x32xf32>
    %58 = vector.extract_strided_slice %50 {offsets = [0, 64], sizes = [8, 32], strides = [1, 1]} : vector<8x96xf32> to vector<8x32xf32>
    %59 = math.tanh %57 : vector<8x32xf32>
    %60 = arith.mulf %58, %59 : vector<8x32xf32>
    %61 = arith.truncf %60 : vector<8x32xf32> to vector<8x32xbf16>
    %62 = tpu.concatenate %61, %17 in 1 : vector<8x32xbf16>, vector<8x32xbf16> -> vector<8x64xbf16>
    %c0_32 = arith.constant 0 : index
    %c0_33 = arith.constant 0 : index
    %63 = vector.load %arg10[%c0_32, %c0_33] : memref<64x128xbf16, #tpu.memory_space<vmem>>, vector<64x128xbf16>
    %cst_34 = arith.constant dense<0.000000e+00> : vector<8x128xf32>
    %64 = tpu.matmul %62, %63, %cst_34 {dimension_numbers = #tpu.dot_dimension_numbers<[1], [0], [0], [1], [0, 0, 1, 1], [], []>} : vector<8x64xbf16>, vector<64x128xbf16>, vector<8x128xf32> -> vector<8x128xf32>
    %65 = vector.broadcast %7 : vector<1x128xf32> to vector<8x128xf32>
    %66 = arith.addf %64, %65 : vector<8x128xf32>
    %67 = vector.extract_strided_slice %66 {offsets = [0, 0], sizes = [8, 96], strides = [1, 1]} : vector<8x128xf32> to vector<8x96xf32>
    %68 = arith.negf %67 : vector<8x96xf32>
    %69 = math.exp %68 : vector<8x96xf32>
    %cst_35 = arith.constant 1.000000e+00 : f32
    %70 = vector.broadcast %cst_35 : f32 to vector<8x96xf32>
    %71 = arith.addf %70, %69 : vector<8x96xf32>
    %72 = arith.divf %70, %71 : vector<8x96xf32>
    %73 = vector.extract_strided_slice %66 {offsets = [0, 96], sizes = [8, 32], strides = [1, 1]} : vector<8x128xf32> to vector<8x32xf32>
    %74 = math.tanh %73 : vector<8x32xf32>
    %75 = vector.extract_strided_slice %72 {offsets = [0, 32], sizes = [8, 32], strides = [1, 1]} : vector<8x96xf32> to vector<8x32xf32>
    %76 = arith.mulf %75, %19 : vector<8x32xf32>
    %77 = vector.extract_strided_slice %72 {offsets = [0, 0], sizes = [8, 32], strides = [1, 1]} : vector<8x96xf32> to vector<8x32xf32>
    %78 = arith.mulf %77, %74 : vector<8x32xf32>
    %79 = arith.addf %76, %78 : vector<8x32xf32>
    %80 = vector.extract_strided_slice %72 {offsets = [0, 64], sizes = [8, 32], strides = [1, 1]} : vector<8x96xf32> to vector<8x32xf32>
    %81 = math.tanh %79 : vector<8x32xf32>
    %82 = arith.mulf %80, %81 : vector<8x32xf32>
    %83 = arith.truncf %82 : vector<8x32xf32> to vector<8x32xbf16>
    %c0_36 = arith.constant 0 : index
    %c0_37 = arith.constant 0 : index
    %84 = vector.load %arg12[%c0_36, %c0_37] : memref<32x128xbf16, #tpu.memory_space<vmem>>, vector<32x128xbf16>
    %cst_38 = arith.constant dense<0.000000e+00> : vector<8x128xf32>
    %85 = tpu.matmul %83, %84, %cst_38 {dimension_numbers = #tpu.dot_dimension_numbers<[1], [0], [0], [1], [0, 0, 1, 1], [], []>} : vector<8x32xbf16>, vector<32x128xbf16>, vector<8x128xf32> -> vector<8x128xf32>
    %c0_39 = arith.constant 0 : index
    %c0_40 = arith.constant 0 : index
    %86 = vector.load %arg13[%c0_39, %c0_40] : memref<1x128xf32, #tpu.memory_space<vmem>>, vector<1x128xf32>
    %87 = vector.broadcast %86 : vector<1x128xf32> to vector<8x128xf32>
    %88 = arith.addf %85, %87 : vector<8x128xf32>
    %89 = arith.index_cast %c0_i32_24 : i32 to index
    %c0_41 = arith.constant 0 : index
    %c0_42 = arith.constant 0 : index
    %90 = vector.load %arg14[%89, %c0_41, %c0_42] : memref<4x8x128xf32, #tpu.memory_space<vmem>>, vector<1x8x128xf32>
    %91 = vector.shape_cast %90 : vector<1x8x128xf32> to vector<8x128xf32>
    %92 = vector.shape_cast %88 : vector<8x128xf32> to vector<1x8x128xf32>
    tpu.vector_store %arg14[%89, %c0_41, %c0_42], %92 {strides = array<i32>} : memref<4x8x128xf32, #tpu.memory_space<vmem>>, vector<1x8x128xf32>,
    %c1_i32 = arith.constant 1 : i32
    %c0_43 = arith.constant 0 : index
    %c0_44 = arith.constant 0 : index
    %93 = vector.load %arg8[%c0_43, %c0_44] : memref<32x128xbf16, #tpu.memory_space<vmem>>, vector<32x128xbf16>
    %cst_45 = arith.constant dense<0.000000e+00> : vector<8x128xf32>
    %94 = tpu.matmul %39, %93, %cst_45 {dimension_numbers = #tpu.dot_dimension_numbers<[1], [0], [0], [1], [0, 0, 1, 1], [], []>} : vector<8x32xbf16>, vector<32x128xbf16>, vector<8x128xf32> -> vector<8x128xf32>
    %95 = arith.addf %3, %94 : vector<8x128xf32>
    %96 = vector.extract_strided_slice %95 {offsets = [0, 0], sizes = [8, 96], strides = [1, 1]} : vector<8x128xf32> to vector<8x96xf32>
    %97 = arith.negf %96 : vector<8x96xf32>
    %98 = math.exp %97 : vector<8x96xf32>
    %cst_46 = arith.constant 1.000000e+00 : f32
    %99 = vector.broadcast %cst_46 : f32 to vector<8x96xf32>
    %100 = arith.addf %99, %98 : vector<8x96xf32>
    %101 = arith.divf %99, %100 : vector<8x96xf32>
    %102 = vector.extract_strided_slice %95 {offsets = [0, 96], sizes = [8, 32], strides = [1, 1]} : vector<8x128xf32> to vector<8x32xf32>
    %103 = math.tanh %102 : vector<8x32xf32>
    %104 = vector.extract_strided_slice %101 {offsets = [0, 32], sizes = [8, 32], strides = [1, 1]} : vector<8x96xf32> to vector<8x32xf32>
    %105 = arith.mulf %104, %35 : vector<8x32xf32>
    %106 = vector.extract_strided_slice %101 {offsets = [0, 0], sizes = [8, 32], strides = [1, 1]} : vector<8x96xf32> to vector<8x32xf32>
    %107 = arith.mulf %106, %103 : vector<8x32xf32>
    %108 = arith.addf %105, %107 : vector<8x32xf32>
    %109 = vector.extract_strided_slice %101 {offsets = [0, 64], sizes = [8, 32], strides = [1, 1]} : vector<8x96xf32> to vector<8x32xf32>
    %110 = math.tanh %108 : vector<8x32xf32>
    %111 = arith.mulf %109, %110 : vector<8x32xf32>
    %112 = arith.truncf %111 : vector<8x32xf32> to vector<8x32xbf16>
    %113 = tpu.concatenate %112, %61 in 1 : vector<8x32xbf16>, vector<8x32xbf16> -> vector<8x64xbf16>
    %c0_47 = arith.constant 0 : index
    %c0_48 = arith.constant 0 : index
    %114 = vector.load %arg9[%c0_47, %c0_48] : memref<64x128xbf16, #tpu.memory_space<vmem>>, vector<64x128xbf16>
    %cst_49 = arith.constant dense<0.000000e+00> : vector<8x128xf32>
    %115 = tpu.matmul %113, %114, %cst_49 {dimension_numbers = #tpu.dot_dimension_numbers<[1], [0], [0], [1], [0, 0, 1, 1], [], []>} : vector<8x64xbf16>, vector<64x128xbf16>, vector<8x128xf32> -> vector<8x128xf32>
    %116 = vector.broadcast %5 : vector<1x128xf32> to vector<8x128xf32>
    %117 = arith.addf %115, %116 : vector<8x128xf32>
    %118 = vector.extract_strided_slice %117 {offsets = [0, 0], sizes = [8, 96], strides = [1, 1]} : vector<8x128xf32> to vector<8x96xf32>
    %119 = arith.negf %118 : vector<8x96xf32>
    %120 = math.exp %119 : vector<8x96xf32>
    %cst_50 = arith.constant 1.000000e+00 : f32
    %121 = vector.broadcast %cst_50 : f32 to vector<8x96xf32>
    %122 = arith.addf %121, %120 : vector<8x96xf32>
    %123 = arith.divf %121, %122 : vector<8x96xf32>
    %124 = vector.extract_strided_slice %117 {offsets = [0, 96], sizes = [8, 32], strides = [1, 1]} : vector<8x128xf32> to vector<8x32xf32>
    %125 = math.tanh %124 : vector<8x32xf32>
    %126 = vector.extract_strided_slice %123 {offsets = [0, 32], sizes = [8, 32], strides = [1, 1]} : vector<8x96xf32> to vector<8x32xf32>
    %127 = arith.mulf %126, %57 : vector<8x32xf32>
    %128 = vector.extract_strided_slice %123 {offsets = [0, 0], sizes = [8, 32], strides = [1, 1]} : vector<8x96xf32> to vector<8x32xf32>
    %129 = arith.mulf %128, %125 : vector<8x32xf32>
    %130 = arith.addf %127, %129 : vector<8x32xf32>
    %131 = vector.extract_strided_slice %123 {offsets = [0, 64], sizes = [8, 32], strides = [1, 1]} : vector<8x96xf32> to vector<8x32xf32>
    %132 = math.tanh %130 : vector<8x32xf32>
    %133 = arith.mulf %131, %132 : vector<8x32xf32>
    %134 = arith.truncf %133 : vector<8x32xf32> to vector<8x32xbf16>
    %135 = tpu.concatenate %134, %83 in 1 : vector<8x32xbf16>, vector<8x32xbf16> -> vector<8x64xbf16>
    %c0_51 = arith.constant 0 : index
    %c0_52 = arith.constant 0 : index
    %136 = vector.load %arg10[%c0_51, %c0_52] : memref<64x128xbf16, #tpu.memory_space<vmem>>, vector<64x128xbf16>
    %cst_53 = arith.constant dense<0.000000e+00> : vector<8x128xf32>
    %137 = tpu.matmul %135, %136, %cst_53 {dimension_numbers = #tpu.dot_dimension_numbers<[1], [0], [0], [1], [0, 0, 1, 1], [], []>} : vector<8x64xbf16>, vector<64x128xbf16>, vector<8x128xf32> -> vector<8x128xf32>
    %138 = vector.broadcast %7 : vector<1x128xf32> to vector<8x128xf32>
    %139 = arith.addf %137, %138 : vector<8x128xf32>
    %140 = vector.extract_strided_slice %139 {offsets = [0, 0], sizes = [8, 96], strides = [1, 1]} : vector<8x128xf32> to vector<8x96xf32>
    %141 = arith.negf %140 : vector<8x96xf32>
    %142 = math.exp %141 : vector<8x96xf32>
    %cst_54 = arith.constant 1.000000e+00 : f32
    %143 = vector.broadcast %cst_54 : f32 to vector<8x96xf32>
    %144 = arith.addf %143, %142 : vector<8x96xf32>
    %145 = arith.divf %143, %144 : vector<8x96xf32>
    %146 = vector.extract_strided_slice %139 {offsets = [0, 96], sizes = [8, 32], strides = [1, 1]} : vector<8x128xf32> to vector<8x32xf32>
    %147 = math.tanh %146 : vector<8x32xf32>
    %148 = vector.extract_strided_slice %145 {offsets = [0, 32], sizes = [8, 32], strides = [1, 1]} : vector<8x96xf32> to vector<8x32xf32>
    %149 = arith.mulf %148, %79 : vector<8x32xf32>
    %150 = vector.extract_strided_slice %145 {offsets = [0, 0], sizes = [8, 32], strides = [1, 1]} : vector<8x96xf32> to vector<8x32xf32>
    %151 = arith.mulf %150, %147 : vector<8x32xf32>
    %152 = arith.addf %149, %151 : vector<8x32xf32>
    %153 = vector.extract_strided_slice %145 {offsets = [0, 64], sizes = [8, 32], strides = [1, 1]} : vector<8x96xf32> to vector<8x32xf32>
    %154 = math.tanh %152 : vector<8x32xf32>
    %155 = arith.mulf %153, %154 : vector<8x32xf32>
    %156 = arith.truncf %155 : vector<8x32xf32> to vector<8x32xbf16>
    %c0_55 = arith.constant 0 : index
    %c0_56 = arith.constant 0 : index
    %157 = vector.load %arg12[%c0_55, %c0_56] : memref<32x128xbf16, #tpu.memory_space<vmem>>, vector<32x128xbf16>
    %cst_57 = arith.constant dense<0.000000e+00> : vector<8x128xf32>
    %158 = tpu.matmul %156, %157, %cst_57 {dimension_numbers = #tpu.dot_dimension_numbers<[1], [0], [0], [1], [0, 0, 1, 1], [], []>} : vector<8x32xbf16>, vector<32x128xbf16>, vector<8x128xf32> -> vector<8x128xf32>
    %c0_58 = arith.constant 0 : index
    %c0_59 = arith.constant 0 : index
    %159 = vector.load %arg13[%c0_58, %c0_59] : memref<1x128xf32, #tpu.memory_space<vmem>>, vector<1x128xf32>
    %160 = vector.broadcast %159 : vector<1x128xf32> to vector<8x128xf32>
    %161 = arith.addf %158, %160 : vector<8x128xf32>
    %162 = arith.index_cast %c1_i32 : i32 to index
    %c0_60 = arith.constant 0 : index
    %c0_61 = arith.constant 0 : index
    %163 = vector.load %arg14[%162, %c0_60, %c0_61] : memref<4x8x128xf32, #tpu.memory_space<vmem>>, vector<1x8x128xf32>
    %164 = vector.shape_cast %163 : vector<1x8x128xf32> to vector<8x128xf32>
    %165 = vector.shape_cast %161 : vector<8x128xf32> to vector<1x8x128xf32>
    tpu.vector_store %arg14[%162, %c0_60, %c0_61], %165 {strides = array<i32>} : memref<4x8x128xf32, #tpu.memory_space<vmem>>, vector<1x8x128xf32>,
    %c2_i32 = arith.constant 2 : i32
    %c0_62 = arith.constant 0 : index
    %c0_63 = arith.constant 0 : index
    %166 = vector.load %arg8[%c0_62, %c0_63] : memref<32x128xbf16, #tpu.memory_space<vmem>>, vector<32x128xbf16>
    %cst_64 = arith.constant dense<0.000000e+00> : vector<8x128xf32>
    %167 = tpu.matmul %112, %166, %cst_64 {dimension_numbers = #tpu.dot_dimension_numbers<[1], [0], [0], [1], [0, 0, 1, 1], [], []>} : vector<8x32xbf16>, vector<32x128xbf16>, vector<8x128xf32> -> vector<8x128xf32>
    %168 = arith.addf %3, %167 : vector<8x128xf32>
    %169 = vector.extract_strided_slice %168 {offsets = [0, 0], sizes = [8, 96], strides = [1, 1]} : vector<8x128xf32> to vector<8x96xf32>
    %170 = arith.negf %169 : vector<8x96xf32>
    %171 = math.exp %170 : vector<8x96xf32>
    %cst_65 = arith.constant 1.000000e+00 : f32
    %172 = vector.broadcast %cst_65 : f32 to vector<8x96xf32>
    %173 = arith.addf %172, %171 : vector<8x96xf32>
    %174 = arith.divf %172, %173 : vector<8x96xf32>
    %175 = vector.extract_strided_slice %168 {offsets = [0, 96], sizes = [8, 32], strides = [1, 1]} : vector<8x128xf32> to vector<8x32xf32>
    %176 = math.tanh %175 : vector<8x32xf32>
    %177 = vector.extract_strided_slice %174 {offsets = [0, 32], sizes = [8, 32], strides = [1, 1]} : vector<8x96xf32> to vector<8x32xf32>
    %178 = arith.mulf %177, %108 : vector<8x32xf32>
    %179 = vector.extract_strided_slice %174 {offsets = [0, 0], sizes = [8, 32], strides = [1, 1]} : vector<8x96xf32> to vector<8x32xf32>
    %180 = arith.mulf %179, %176 : vector<8x32xf32>
    %181 = arith.addf %178, %180 : vector<8x32xf32>
    %182 = vector.extract_strided_slice %174 {offsets = [0, 64], sizes = [8, 32], strides = [1, 1]} : vector<8x96xf32> to vector<8x32xf32>
    %183 = math.tanh %181 : vector<8x32xf32>
    %184 = arith.mulf %182, %183 : vector<8x32xf32>
    %185 = arith.truncf %184 : vector<8x32xf32> to vector<8x32xbf16>
    %186 = tpu.concatenate %185, %134 in 1 : vector<8x32xbf16>, vector<8x32xbf16> -> vector<8x64xbf16>
    %c0_66 = arith.constant 0 : index
    %c0_67 = arith.constant 0 : index
    %187 = vector.load %arg9[%c0_66, %c0_67] : memref<64x128xbf16, #tpu.memory_space<vmem>>, vector<64x128xbf16>
    %cst_68 = arith.constant dense<0.000000e+00> : vector<8x128xf32>
    %188 = tpu.matmul %186, %187, %cst_68 {dimension_numbers = #tpu.dot_dimension_numbers<[1], [0], [0], [1], [0, 0, 1, 1], [], []>} : vector<8x64xbf16>, vector<64x128xbf16>, vector<8x128xf32> -> vector<8x128xf32>
    %189 = vector.broadcast %5 : vector<1x128xf32> to vector<8x128xf32>
    %190 = arith.addf %188, %189 : vector<8x128xf32>
    %191 = vector.extract_strided_slice %190 {offsets = [0, 0], sizes = [8, 96], strides = [1, 1]} : vector<8x128xf32> to vector<8x96xf32>
    %192 = arith.negf %191 : vector<8x96xf32>
    %193 = math.exp %192 : vector<8x96xf32>
    %cst_69 = arith.constant 1.000000e+00 : f32
    %194 = vector.broadcast %cst_69 : f32 to vector<8x96xf32>
    %195 = arith.addf %194, %193 : vector<8x96xf32>
    %196 = arith.divf %194, %195 : vector<8x96xf32>
    %197 = vector.extract_strided_slice %190 {offsets = [0, 96], sizes = [8, 32], strides = [1, 1]} : vector<8x128xf32> to vector<8x32xf32>
    %198 = math.tanh %197 : vector<8x32xf32>
    %199 = vector.extract_strided_slice %196 {offsets = [0, 32], sizes = [8, 32], strides = [1, 1]} : vector<8x96xf32> to vector<8x32xf32>
    %200 = arith.mulf %199, %130 : vector<8x32xf32>
    %201 = vector.extract_strided_slice %196 {offsets = [0, 0], sizes = [8, 32], strides = [1, 1]} : vector<8x96xf32> to vector<8x32xf32>
    %202 = arith.mulf %201, %198 : vector<8x32xf32>
    %203 = arith.addf %200, %202 : vector<8x32xf32>
    %204 = vector.extract_strided_slice %196 {offsets = [0, 64], sizes = [8, 32], strides = [1, 1]} : vector<8x96xf32> to vector<8x32xf32>
    %205 = math.tanh %203 : vector<8x32xf32>
    %206 = arith.mulf %204, %205 : vector<8x32xf32>
    %207 = arith.truncf %206 : vector<8x32xf32> to vector<8x32xbf16>
    %208 = tpu.concatenate %207, %156 in 1 : vector<8x32xbf16>, vector<8x32xbf16> -> vector<8x64xbf16>
    %c0_70 = arith.constant 0 : index
    %c0_71 = arith.constant 0 : index
    %209 = vector.load %arg10[%c0_70, %c0_71] : memref<64x128xbf16, #tpu.memory_space<vmem>>, vector<64x128xbf16>
    %cst_72 = arith.constant dense<0.000000e+00> : vector<8x128xf32>
    %210 = tpu.matmul %208, %209, %cst_72 {dimension_numbers = #tpu.dot_dimension_numbers<[1], [0], [0], [1], [0, 0, 1, 1], [], []>} : vector<8x64xbf16>, vector<64x128xbf16>, vector<8x128xf32> -> vector<8x128xf32>
    %211 = vector.broadcast %7 : vector<1x128xf32> to vector<8x128xf32>
    %212 = arith.addf %210, %211 : vector<8x128xf32>
    %213 = vector.extract_strided_slice %212 {offsets = [0, 0], sizes = [8, 96], strides = [1, 1]} : vector<8x128xf32> to vector<8x96xf32>
    %214 = arith.negf %213 : vector<8x96xf32>
    %215 = math.exp %214 : vector<8x96xf32>
    %cst_73 = arith.constant 1.000000e+00 : f32
    %216 = vector.broadcast %cst_73 : f32 to vector<8x96xf32>
    %217 = arith.addf %216, %215 : vector<8x96xf32>
    %218 = arith.divf %216, %217 : vector<8x96xf32>
    %219 = vector.extract_strided_slice %212 {offsets = [0, 96], sizes = [8, 32], strides = [1, 1]} : vector<8x128xf32> to vector<8x32xf32>
    %220 = math.tanh %219 : vector<8x32xf32>
    %221 = vector.extract_strided_slice %218 {offsets = [0, 32], sizes = [8, 32], strides = [1, 1]} : vector<8x96xf32> to vector<8x32xf32>
    %222 = arith.mulf %221, %152 : vector<8x32xf32>
    %223 = vector.extract_strided_slice %218 {offsets = [0, 0], sizes = [8, 32], strides = [1, 1]} : vector<8x96xf32> to vector<8x32xf32>
    %224 = arith.mulf %223, %220 : vector<8x32xf32>
    %225 = arith.addf %222, %224 : vector<8x32xf32>
    %226 = vector.extract_strided_slice %218 {offsets = [0, 64], sizes = [8, 32], strides = [1, 1]} : vector<8x96xf32> to vector<8x32xf32>
    %227 = math.tanh %225 : vector<8x32xf32>
    %228 = arith.mulf %226, %227 : vector<8x32xf32>
    %229 = arith.truncf %228 : vector<8x32xf32> to vector<8x32xbf16>
    %c0_74 = arith.constant 0 : index
    %c0_75 = arith.constant 0 : index
    %230 = vector.load %arg12[%c0_74, %c0_75] : memref<32x128xbf16, #tpu.memory_space<vmem>>, vector<32x128xbf16>
    %cst_76 = arith.constant dense<0.000000e+00> : vector<8x128xf32>
    %231 = tpu.matmul %229, %230, %cst_76 {dimension_numbers = #tpu.dot_dimension_numbers<[1], [0], [0], [1], [0, 0, 1, 1], [], []>} : vector<8x32xbf16>, vector<32x128xbf16>, vector<8x128xf32> -> vector<8x128xf32>
    %c0_77 = arith.constant 0 : index
    %c0_78 = arith.constant 0 : index
    %232 = vector.load %arg13[%c0_77, %c0_78] : memref<1x128xf32, #tpu.memory_space<vmem>>, vector<1x128xf32>
    %233 = vector.broadcast %232 : vector<1x128xf32> to vector<8x128xf32>
    %234 = arith.addf %231, %233 : vector<8x128xf32>
    %235 = arith.index_cast %c2_i32 : i32 to index
    %c0_79 = arith.constant 0 : index
    %c0_80 = arith.constant 0 : index
    %236 = vector.load %arg14[%235, %c0_79, %c0_80] : memref<4x8x128xf32, #tpu.memory_space<vmem>>, vector<1x8x128xf32>
    %237 = vector.shape_cast %236 : vector<1x8x128xf32> to vector<8x128xf32>
    %238 = vector.shape_cast %234 : vector<8x128xf32> to vector<1x8x128xf32>
    tpu.vector_store %arg14[%235, %c0_79, %c0_80], %238 {strides = array<i32>} : memref<4x8x128xf32, #tpu.memory_space<vmem>>, vector<1x8x128xf32>,
    %c3_i32 = arith.constant 3 : i32
    %c0_81 = arith.constant 0 : index
    %c0_82 = arith.constant 0 : index
    %239 = vector.load %arg8[%c0_81, %c0_82] : memref<32x128xbf16, #tpu.memory_space<vmem>>, vector<32x128xbf16>
    %cst_83 = arith.constant dense<0.000000e+00> : vector<8x128xf32>
    %240 = tpu.matmul %185, %239, %cst_83 {dimension_numbers = #tpu.dot_dimension_numbers<[1], [0], [0], [1], [0, 0, 1, 1], [], []>} : vector<8x32xbf16>, vector<32x128xbf16>, vector<8x128xf32> -> vector<8x128xf32>
    %241 = arith.addf %3, %240 : vector<8x128xf32>
    %242 = vector.extract_strided_slice %241 {offsets = [0, 0], sizes = [8, 96], strides = [1, 1]} : vector<8x128xf32> to vector<8x96xf32>
    %243 = arith.negf %242 : vector<8x96xf32>
    %244 = math.exp %243 : vector<8x96xf32>
    %cst_84 = arith.constant 1.000000e+00 : f32
    %245 = vector.broadcast %cst_84 : f32 to vector<8x96xf32>
    %246 = arith.addf %245, %244 : vector<8x96xf32>
    %247 = arith.divf %245, %246 : vector<8x96xf32>
    %248 = vector.extract_strided_slice %241 {offsets = [0, 96], sizes = [8, 32], strides = [1, 1]} : vector<8x128xf32> to vector<8x32xf32>
    %249 = math.tanh %248 : vector<8x32xf32>
    %250 = vector.extract_strided_slice %247 {offsets = [0, 32], sizes = [8, 32], strides = [1, 1]} : vector<8x96xf32> to vector<8x32xf32>
    %251 = arith.mulf %250, %181 : vector<8x32xf32>
    %252 = vector.extract_strided_slice %247 {offsets = [0, 0], sizes = [8, 32], strides = [1, 1]} : vector<8x96xf32> to vector<8x32xf32>
    %253 = arith.mulf %252, %249 : vector<8x32xf32>
    %254 = arith.addf %251, %253 : vector<8x32xf32>
    %255 = vector.extract_strided_slice %247 {offsets = [0, 64], sizes = [8, 32], strides = [1, 1]} : vector<8x96xf32> to vector<8x32xf32>
    %256 = math.tanh %254 : vector<8x32xf32>
    %257 = arith.mulf %255, %256 : vector<8x32xf32>
    %258 = arith.truncf %257 : vector<8x32xf32> to vector<8x32xbf16>
    %259 = tpu.concatenate %258, %207 in 1 : vector<8x32xbf16>, vector<8x32xbf16> -> vector<8x64xbf16>
    %c0_85 = arith.constant 0 : index
    %c0_86 = arith.constant 0 : index
    %260 = vector.load %arg9[%c0_85, %c0_86] : memref<64x128xbf16, #tpu.memory_space<vmem>>, vector<64x128xbf16>
    %cst_87 = arith.constant dense<0.000000e+00> : vector<8x128xf32>
    %261 = tpu.matmul %259, %260, %cst_87 {dimension_numbers = #tpu.dot_dimension_numbers<[1], [0], [0], [1], [0, 0, 1, 1], [], []>} : vector<8x64xbf16>, vector<64x128xbf16>, vector<8x128xf32> -> vector<8x128xf32>
    %262 = vector.broadcast %5 : vector<1x128xf32> to vector<8x128xf32>
    %263 = arith.addf %261, %262 : vector<8x128xf32>
    %264 = vector.extract_strided_slice %263 {offsets = [0, 0], sizes = [8, 96], strides = [1, 1]} : vector<8x128xf32> to vector<8x96xf32>
    %265 = arith.negf %264 : vector<8x96xf32>
    %266 = math.exp %265 : vector<8x96xf32>
    %cst_88 = arith.constant 1.000000e+00 : f32
    %267 = vector.broadcast %cst_88 : f32 to vector<8x96xf32>
    %268 = arith.addf %267, %266 : vector<8x96xf32>
    %269 = arith.divf %267, %268 : vector<8x96xf32>
    %270 = vector.extract_strided_slice %263 {offsets = [0, 96], sizes = [8, 32], strides = [1, 1]} : vector<8x128xf32> to vector<8x32xf32>
    %271 = math.tanh %270 : vector<8x32xf32>
    %272 = vector.extract_strided_slice %269 {offsets = [0, 32], sizes = [8, 32], strides = [1, 1]} : vector<8x96xf32> to vector<8x32xf32>
    %273 = arith.mulf %272, %203 : vector<8x32xf32>
    %274 = vector.extract_strided_slice %269 {offsets = [0, 0], sizes = [8, 32], strides = [1, 1]} : vector<8x96xf32> to vector<8x32xf32>
    %275 = arith.mulf %274, %271 : vector<8x32xf32>
    %276 = arith.addf %273, %275 : vector<8x32xf32>
    %277 = vector.extract_strided_slice %269 {offsets = [0, 64], sizes = [8, 32], strides = [1, 1]} : vector<8x96xf32> to vector<8x32xf32>
    %278 = math.tanh %276 : vector<8x32xf32>
    %279 = arith.mulf %277, %278 : vector<8x32xf32>
    %280 = arith.truncf %279 : vector<8x32xf32> to vector<8x32xbf16>
    %281 = tpu.concatenate %280, %229 in 1 : vector<8x32xbf16>, vector<8x32xbf16> -> vector<8x64xbf16>
    %c0_89 = arith.constant 0 : index
    %c0_90 = arith.constant 0 : index
    %282 = vector.load %arg10[%c0_89, %c0_90] : memref<64x128xbf16, #tpu.memory_space<vmem>>, vector<64x128xbf16>
    %cst_91 = arith.constant dense<0.000000e+00> : vector<8x128xf32>
    %283 = tpu.matmul %281, %282, %cst_91 {dimension_numbers = #tpu.dot_dimension_numbers<[1], [0], [0], [1], [0, 0, 1, 1], [], []>} : vector<8x64xbf16>, vector<64x128xbf16>, vector<8x128xf32> -> vector<8x128xf32>
    %284 = vector.broadcast %7 : vector<1x128xf32> to vector<8x128xf32>
    %285 = arith.addf %283, %284 : vector<8x128xf32>
    %286 = vector.extract_strided_slice %285 {offsets = [0, 0], sizes = [8, 96], strides = [1, 1]} : vector<8x128xf32> to vector<8x96xf32>
    %287 = arith.negf %286 : vector<8x96xf32>
    %288 = math.exp %287 : vector<8x96xf32>
    %cst_92 = arith.constant 1.000000e+00 : f32
    %289 = vector.broadcast %cst_92 : f32 to vector<8x96xf32>
    %290 = arith.addf %289, %288 : vector<8x96xf32>
    %291 = arith.divf %289, %290 : vector<8x96xf32>
    %292 = vector.extract_strided_slice %285 {offsets = [0, 96], sizes = [8, 32], strides = [1, 1]} : vector<8x128xf32> to vector<8x32xf32>
    %293 = math.tanh %292 : vector<8x32xf32>
    %294 = vector.extract_strided_slice %291 {offsets = [0, 32], sizes = [8, 32], strides = [1, 1]} : vector<8x96xf32> to vector<8x32xf32>
    %295 = arith.mulf %294, %225 : vector<8x32xf32>
    %296 = vector.extract_strided_slice %291 {offsets = [0, 0], sizes = [8, 32], strides = [1, 1]} : vector<8x96xf32> to vector<8x32xf32>
    %297 = arith.mulf %296, %293 : vector<8x32xf32>
    %298 = arith.addf %295, %297 : vector<8x32xf32>
    %299 = vector.extract_strided_slice %291 {offsets = [0, 64], sizes = [8, 32], strides = [1, 1]} : vector<8x96xf32> to vector<8x32xf32>
    %300 = math.tanh %298 : vector<8x32xf32>
    %301 = arith.mulf %299, %300 : vector<8x32xf32>
    %302 = arith.truncf %301 : vector<8x32xf32> to vector<8x32xbf16>
    %c0_93 = arith.constant 0 : index
    %c0_94 = arith.constant 0 : index
    %303 = vector.load %arg12[%c0_93, %c0_94] : memref<32x128xbf16, #tpu.memory_space<vmem>>, vector<32x128xbf16>
    %cst_95 = arith.constant dense<0.000000e+00> : vector<8x128xf32>
    %304 = tpu.matmul %302, %303, %cst_95 {dimension_numbers = #tpu.dot_dimension_numbers<[1], [0], [0], [1], [0, 0, 1, 1], [], []>} : vector<8x32xbf16>, vector<32x128xbf16>, vector<8x128xf32> -> vector<8x128xf32>
    %c0_96 = arith.constant 0 : index
    %c0_97 = arith.constant 0 : index
    %305 = vector.load %arg13[%c0_96, %c0_97] : memref<1x128xf32, #tpu.memory_space<vmem>>, vector<1x128xf32>
    %306 = vector.broadcast %305 : vector<1x128xf32> to vector<8x128xf32>
    %307 = arith.addf %304, %306 : vector<8x128xf32>
    %308 = arith.index_cast %c3_i32 : i32 to index
    %c0_98 = arith.constant 0 : index
    %c0_99 = arith.constant 0 : index
    %309 = vector.load %arg14[%308, %c0_98, %c0_99] : memref<4x8x128xf32, #tpu.memory_space<vmem>>, vector<1x8x128xf32>
    %310 = vector.shape_cast %309 : vector<1x8x128xf32> to vector<8x128xf32>
    %311 = vector.shape_cast %307 : vector<8x128xf32> to vector<1x8x128xf32>
    tpu.vector_store %arg14[%308, %c0_98, %c0_99], %311 {strides = array<i32>} : memref<4x8x128xf32, #tpu.memory_space<vmem>>, vector<1x8x128xf32>,
    %c4_i32 = arith.constant 4 : i32
    %c0_100 = arith.constant 0 : index
    %c0_101 = arith.constant 0 : index
    %c0_102 = arith.constant 0 : index
    %312 = vector.load %arg16[%c0_100, %c0_101, %c0_102] : memref<3x8x32xbf16, #tpu.memory_space<vmem>>, vector<1x8x32xbf16>
    %313 = vector.shape_cast %312 : vector<1x8x32xbf16> to vector<8x32xbf16>
    %314 = vector.shape_cast %258 : vector<8x32xbf16> to vector<1x8x32xbf16>
    tpu.vector_store %arg16[%c0_100, %c0_101, %c0_102], %314 {strides = array<i32>} : memref<3x8x32xbf16, #tpu.memory_space<vmem>>, vector<1x8x32xbf16>,
    %c0_103 = arith.constant 0 : index
    %c0_104 = arith.constant 0 : index
    %c0_105 = arith.constant 0 : index
    %315 = vector.load %arg17[%c0_103, %c0_104, %c0_105] : memref<3x8x32xf32, #tpu.memory_space<vmem>>, vector<1x8x32xf32>
    %316 = vector.shape_cast %315 : vector<1x8x32xf32> to vector<8x32xf32>
    %317 = vector.shape_cast %254 : vector<8x32xf32> to vector<1x8x32xf32>
    tpu.vector_store %arg17[%c0_103, %c0_104, %c0_105], %317 {strides = array<i32>} : memref<3x8x32xf32, #tpu.memory_space<vmem>>, vector<1x8x32xf32>,
    %c1_106 = arith.constant 1 : index
    %c0_107 = arith.constant 0 : index
    %c0_108 = arith.constant 0 : index
    %318 = vector.load %arg16[%c1_106, %c0_107, %c0_108] : memref<3x8x32xbf16, #tpu.memory_space<vmem>>, vector<1x8x32xbf16>
    %319 = vector.shape_cast %318 : vector<1x8x32xbf16> to vector<8x32xbf16>
    %320 = vector.shape_cast %280 : vector<8x32xbf16> to vector<1x8x32xbf16>
    tpu.vector_store %arg16[%c1_106, %c0_107, %c0_108], %320 {strides = array<i32>} : memref<3x8x32xbf16, #tpu.memory_space<vmem>>, vector<1x8x32xbf16>,
    %c1_109 = arith.constant 1 : index
    %c0_110 = arith.constant 0 : index
    %c0_111 = arith.constant 0 : index
    %321 = vector.load %arg17[%c1_109, %c0_110, %c0_111] : memref<3x8x32xf32, #tpu.memory_space<vmem>>, vector<1x8x32xf32>
    %322 = vector.shape_cast %321 : vector<1x8x32xf32> to vector<8x32xf32>
    %323 = vector.shape_cast %276 : vector<8x32xf32> to vector<1x8x32xf32>
    tpu.vector_store %arg17[%c1_109, %c0_110, %c0_111], %323 {strides = array<i32>} : memref<3x8x32xf32, #tpu.memory_space<vmem>>, vector<1x8x32xf32>,
    %c2_112 = arith.constant 2 : index
    %c0_113 = arith.constant 0 : index
    %c0_114 = arith.constant 0 : index
    %324 = vector.load %arg16[%c2_112, %c0_113, %c0_114] : memref<3x8x32xbf16, #tpu.memory_space<vmem>>, vector<1x8x32xbf16>
    %325 = vector.shape_cast %324 : vector<1x8x32xbf16> to vector<8x32xbf16>
    %326 = vector.shape_cast %302 : vector<8x32xbf16> to vector<1x8x32xbf16>
    tpu.vector_store %arg16[%c2_112, %c0_113, %c0_114], %326 {strides = array<i32>} : memref<3x8x32xbf16, #tpu.memory_space<vmem>>, vector<1x8x32xbf16>,
    %c2_115 = arith.constant 2 : index
    %c0_116 = arith.constant 0 : index
    %c0_117 = arith.constant 0 : index
    %327 = vector.load %arg17[%c2_115, %c0_116, %c0_117] : memref<3x8x32xf32, #tpu.memory_space<vmem>>, vector<1x8x32xf32>
    %328 = vector.shape_cast %327 : vector<1x8x32xf32> to vector<8x32xf32>
    %329 = vector.shape_cast %298 : vector<8x32xf32> to vector<1x8x32xf32>
    tpu.vector_store %arg17[%c2_115, %c0_116, %c0_117], %329 {strides = array<i32>} : memref<3x8x32xf32, #tpu.memory_space<vmem>>, vector<1x8x32xf32>,
    return
  }
  func.func @transform_0(%arg0: i32, %arg1: i32) -> (i32, i32) {
    %c0_i32 = arith.constant 0 : i32
    %c0_i32_0 = arith.constant 0 : i32
    return %arg0, %c0_i32 : i32, i32
  }
  func.func @transform_1(%arg0: i32, %arg1: i32) -> (i32, i32) {
    %c0_i32 = arith.constant 0 : i32
    %c0_i32_0 = arith.constant 0 : i32
    %c0_i32_1 = arith.constant 0 : i32
    return %c0_i32, %c0_i32_0 : i32, i32
  }
  func.func @transform_2(%arg0: i32, %arg1: i32) -> (i32, i32) {
    %c0_i32 = arith.constant 0 : i32
    %c0_i32_0 = arith.constant 0 : i32
    %c0_i32_1 = arith.constant 0 : i32
    return %c0_i32, %c0_i32_0 : i32, i32
  }
  func.func @transform_3(%arg0: i32, %arg1: i32) -> (i32, i32) {
    %c0_i32 = arith.constant 0 : i32
    %c0_i32_0 = arith.constant 0 : i32
    %c0_i32_1 = arith.constant 0 : i32
    return %c0_i32, %c0_i32_0 : i32, i32
  }
  func.func @transform_4(%arg0: i32, %arg1: i32) -> (i32, i32) {
    %c0_i32 = arith.constant 0 : i32
    %c0_i32_0 = arith.constant 0 : i32
    %c0_i32_1 = arith.constant 0 : i32
    return %c0_i32, %c0_i32_0 : i32, i32
  }
  func.func @transform_5(%arg0: i32, %arg1: i32) -> (i32, i32) {
    %c0_i32 = arith.constant 0 : i32
    %c0_i32_0 = arith.constant 0 : i32
    %c0_i32_1 = arith.constant 0 : i32
    return %c0_i32, %c0_i32_0 : i32, i32
  }
  func.func @transform_6(%arg0: i32, %arg1: i32) -> (i32, i32) {
    %c0_i32 = arith.constant 0 : i32
    %c0_i32_0 = arith.constant 0 : i32
    %c0_i32_1 = arith.constant 0 : i32
    return %c0_i32, %c0_i32_0 : i32, i32
  }
  func.func @transform_7(%arg0: i32, %arg1: i32) -> (i32, i32) {
    %c0_i32 = arith.constant 0 : i32
    %c0_i32_0 = arith.constant 0 : i32
    %c0_i32_1 = arith.constant 0 : i32
    return %c0_i32, %c0_i32_0 : i32, i32
  }
  func.func @transform_8(%arg0: i32, %arg1: i32) -> (i32, i32) {
    %c0_i32 = arith.constant 0 : i32
    %c0_i32_0 = arith.constant 0 : i32
    %c0_i32_1 = arith.constant 0 : i32
    return %c0_i32, %c0_i32_0 : i32, i32
  }
  func.func @transform_9(%arg0: i32, %arg1: i32) -> (i32, i32, i32) {
    %c0_i32 = arith.constant 0 : i32
    %c0_i32_0 = arith.constant 0 : i32
    %c0_i32_1 = arith.constant 0 : i32
    %c0_i32_2 = arith.constant 0 : i32
    return %c0_i32, %c0_i32_0, %c0_i32_1 : i32, i32, i32
  }
  func.func @transform_10(%arg0: i32, %arg1: i32) -> (i32, i32) {
    %c0_i32 = arith.constant 0 : i32
    %c0_i32_0 = arith.constant 0 : i32
    %c0_i32_1 = arith.constant 0 : i32
    return %c0_i32, %c0_i32_0 : i32, i32
  }
  func.func @transform_11(%arg0: i32, %arg1: i32) -> (i32, i32) {
    %c0_i32 = arith.constant 0 : i32
    %c0_i32_0 = arith.constant 0 : i32
    %c0_i32_1 = arith.constant 0 : i32
    return %c0_i32, %c0_i32_0 : i32, i32
  }
  func.func @transform_12(%arg0: i32, %arg1: i32) -> (i32, i32, i32) {
    %c0_i32 = arith.constant 0 : i32
    %c0_i32_0 = arith.constant 0 : i32
    return %arg1, %arg0, %c0_i32 : i32, i32, i32
  }
}

</mosaic_0001>

<bundles_post_ra>
// kernel: life_command_generator_pallas.1
= control target key start
LH: loop header
LB: loop body
LE: loop exit
PB: predicated region body
PF: predicated region fallthrough
CT: control target
= control target key end

     0   :  { %v2369_v0 = vmov 0.0   ;;  %vm2370_vm0 = vmmov 0   ;;  %vm87_vm1 = vcmask 523264   ;;  %vm156_vm2 = vcmask 261120   ;;  %s2374_s13 = smov 96   ;;  %s2946_s1 = inlined_call_operand.vmem [shape: bf16[64,32], index: 1, kind: input, shape index: {}]   ;;  %s2947_s0 = inlined_call_operand.vmem [shape: f32[8,64], index: 0, kind: input, shape index: {}]   ;;  %s2948_s3 = inlined_call_operand.vmem [shape: bf16[32,32], index: 3, kind: input, shape index: {}]   ;;  %s2949_s6 = inlined_call_operand.vmem [shape: bf16[32,128], index: 6, kind: input, shape index: {}]   ;;  %s2950_s5 = inlined_call_operand.vmem [shape: bf16[32,128], index: 5, kind: input, shape index: {}]   ;;  %s2951_s2 = inlined_call_operand.vmem [shape: f32[1,32], index: 2, kind: input, shape index: {}]   ;;  %s2952_s4 = inlined_call_operand.vmem [shape: f32[1,32], index: 4, kind: input, shape index: {}]   ;;  %s2953_s9 = inlined_call_operand.vmem [shape: f32[3,1,128], index: 9, kind: input, shape index: {}]   ;;  %s2954_s7 = inlined_call_operand.vmem [shape: bf16[64,128], index: 7, kind: input, shape index: {}]   ;;  %s2955_s8 = inlined_call_operand.vmem [shape: bf16[64,128], index: 8, kind: input, shape index: {}]   ;;  %s2956_s10 = inlined_call_operand.vmem [shape: bf16[32,128], index: 10, kind: input, shape index: {}]   ;;  %s2957_s11 = inlined_call_operand.vmem [shape: f32[1,128], index: 11, kind: input, shape index: {}]   ;;  %s2958_s12 = inlined_call_operand.vmem [shape: f32[4,8,128], index: 12, kind: output, shape index: {}]  }
   0x1   :  { %2021 = vmatprep.subr.bf16.mxu0 %v2369_v0  ;;  %v2215_v1 = vld [vmem:[%s2946_s1 + $0x18] sm:$0xff]   ;;  %2029 = vmatprep.mubr.msk.bf16.mxu0 %vm2370_vm0, %v2369_v0  ;;  %v2216_v2 = vld [vmem:[%s2946_s1 + $0x10] sm:$0xff]   ;;  %v2217_v3 = vld [vmem:[%s2946_s1 + $0x8] sm:$0xff]   ;;  %273 = vst.msk [vmem:[#allocation4] sm:$0xff] %vm156_vm2, %v2369_v0  ;;  %vm269_vm3 = vcmask 257024   ;;  %v2371_v19 = vmov 0  }
   0x2   :  { %2033 = vmatprep.subr.bf16.mxu1 %v2369_v0  ;;  %2037 = vmatprep.mubr.msk.bf16.mxu1 %vm2370_vm0, %v2369_v0  ;;  %v2218_v4 = vld [vmem:[%s2946_s1] sm:$0xff]   ;;  %v2219_v7 = vld [vmem:[%s2948_s3 + $0x8] sm:$0xff]   ;;  %274 = vst.msk [vmem:[#allocation4 + $0x8] sm:$0xff] %vm156_vm2, %v2369_v0  ;;  %275 = vst.msk [vmem:[#allocation4 + $0x10] sm:$0xff] %vm156_vm2, %v2369_v0  ;;  %s2373_s1 = smov 64  }
   0x3   :  { %2022 = vmatpush3.bf16.msra.mxu0 %v2215_v1  ;;  %v46_v5 = vld [vmem:[%s2947_s0] sm:$0xff]  ;;  %2034 = vmatpush3.bf16.msra.mxu1 %v2219_v7  ;;  %v2221_v9 = vld [vmem:[%s2949_s6 + $0x8] sm:$0xff]   ;;  %270 = vst.msk [vmem:[#allocation3] sm:$0xf] %vm269_vm3, %v2371_v19  ;;  %271 = vst.msk [vmem:[#allocation3 + $0x4] sm:$0xf] %vm269_vm3, %v2371_v19 }
   0x4   :  { %2023 = vmatprep.subr.bf16.mxu0 %v2369_v0  ;;  %v55_v6 = vpack.c.bf16 %v46_v5, %v46_v5  ;;  %2035 = vmatprep.subr.bf16.mxu1 %v2369_v0  ;;  %v2220_v8 = vld [vmem:[%s2948_s3] sm:$0xff]   ;;  %v2222_v16 = vld [vmem:[%s2950_s5 + $0x8] sm:$0xff]   ;;  %272 = vst.msk [vmem:[#allocation3 + $0x8] sm:$0xf] %vm269_vm3, %v2371_v19  ;;  %v2226_v54 = vld [vmem:[%s2954_s7 + $0x18] sm:$0xff]  }
   0x5   :  { %v1837_v10 = vld [vmem:[%s2951_s2] ss:$0 sm:$0xff]  ;;  %v2227_v55 = vld [vmem:[%s2954_s7 + $0x10] sm:$0xff]   ;;  %v2228_v56 = vld [vmem:[%s2954_s7 + $0x8] sm:$0xff]  }
   0x6   :  { %v2223_v20 = vld [vmem:[%s2949_s6] sm:$0xff]  }
   0x7   :  { %2024 = vmatpush3.bf16.msra.mxu0 %v2216_v2  ;;  %2036 = vmatpush3.bf16.msra.mxu1 %v2220_v8  ;;  %v2224_v21 = vld [vmem:[%s2950_s5] sm:$0xff]  }
   0x8   :  { %2025 = vmatprep.subr.bf16.mxu0 %v2369_v0  ;;  %2041 = vmatprep.subr.bf16.mxu1 %v2369_v0  ;;  %v1843_v23 = vld [vmem:[%s2952_s4] ss:$0 sm:$0xff]  ;;  %s2372_s4 = smov 32   ;;  %v282_v43 = vld [vmem:[#allocation4] sm:$0xff] }
   0x9   :  { %v1847_v35 = vld [vmem:[%s2953_s9] ss:$0 sm:$0xff]  ;;  %v286_v60 = vld [vmem:[#allocation4 + $0x8] sm:$0xff] }
   0xa   :  { %v281_v22 = vld [vmem:[#allocation3] sm:$0xf]  ;;  %v2225_v57 = vld [vmem:[#allocation3 + $0x4] ss:$0 sps:$4 sm:$0xff]  }
   0xb   :  { %2026 = vmatpush3.bf16.msra.mxu0 %v2217_v3  ;;  %v2229_v59 = vld [vmem:[%s2954_s7] sm:$0xff]  }
   0xc   :  { %2027 = vmatprep.subr.bf16.mxu0 %v2369_v0 }
   0xf   :  { %2028 = vmatpush3.bf16.msra.mxu0 %v2218_v4  ;;  %v2555_v4 = vld [vmem:[%s2953_s9 + $0x1] ss:$0 sm:$0xff] }
  0x10   :  { %2049 = vmatprep.subr.bf16.mxu0 %v2369_v0 }
  0x12   :  { %2030 = vmatmul.mubr.msk.bf16.vlgmr.msra.gmra.mxu0 %vm87_vm1, %v55_v6 }
  0x13   :  { %2053 = vmatprep.mubr.msk.bf16.mxu0 %vm2370_vm0, %v2369_v0  ;;  %2050 = vmatpush3.bf16.msra.mxu0 %v2221_v9 }
  0x14   :  { %2051 = vmatprep.subr.bf16.mxu0 %v2369_v0 }
  0x17   :  { %2052 = vmatpush3.bf16.msra.mxu0 %v2223_v20 }
  0x18   :  { %2069 = vmatprep.subr.bf16.mxu0 %v2369_v0 }
  0x1a   :  { %2054 = vmatmul.mubr.msk.bf16.vlgmr.msra.gmra.mxu0 %vm156_vm2, %v281_v22  ;;  %v2232_v22 = vld [vmem:[%s2955_s8 + $0x10] sm:$0xff]  }
  0x1b   :  { %2077 = vmatprep.mubr.msk.bf16.mxu0 %vm2370_vm0, %v2369_v0 }
  0xd2   :  { %v125_v11 = vpop.f32.mrf.mxu0 }
  0xd3   :  { %v126_v12 = vadd.f32 %v1837_v10, %v125_v11 }
  0xd4   :  { %v2031_v13 = vpop.f32.mrf.mxu0 }
  0xd5   :  { %v131_v14 = vmax.f32 %v126_v12, 0.0 }
  0xd6   :  { %v128_v15 = vpop.f32.mrf.mxu0 }
  0xd7   :  { %v136_v17 = vpack.c.bf16 %v131_v14, %v131_v14 }
  0xd8   :  { %v2032_v18 = vpop.f32.mrf.mxu0 }
  0xd9   :  { %2038 = vmatmul.mubr.msk.bf16.vlgmr.msra.gmra.mxu1 %vm156_vm2, %v136_v17 }
  0xda   :  { %2042 = vmatpush3.bf16.msra.mxu1 %v2222_v16  ;;  %2045 = vmatprep.mubr.msk.bf16.mxu1 %vm2370_vm0, %v2369_v0  ;;  %v345_v31 = vpop.f32.mrf.mxu0 }
  0xdb   :  { %2043 = vmatprep.subr.bf16.mxu1 %v2369_v0 }
  0xdc   :  { %v2055_v32 = vpop.f32.mrf.mxu0 }
  0xde   :  { %2044 = vmatpush3.bf16.msra.mxu1 %v2224_v21  ;;  %v348_v33 = vpop.f32.mrf.mxu0  ;;  %v2231_v21 = vld [vmem:[%s2955_s8 + $0x18] sm:$0xff]  }
  0xdf   :  { %2057 = vmatprep.subr.bf16.mxu1 %v2369_v0  ;;  %2070 = vmatpush3.bf16.msra.mxu0 %v2231_v21  ;;  %v2241_v21 = vld [vmem:[%s2954_s7 + $0x8] sm:$0xff]  }
  0xe0   :  { %v2056_v34 = vpop.f32.mrf.mxu0  ;;  %2071 = vmatprep.subr.bf16.mxu0 %v2369_v0 }
  0xe1   :  { %v2236_v34 = vld [vmem:[%s2949_s6] sm:$0xff]  }
  0xe3   :  { %2072 = vmatpush3.bf16.msra.mxu0 %v2232_v22  ;;  %v2242_v22 = vld [vmem:[%s2954_s7] sm:$0xff]  }
  0xe4   :  { %2073 = vmatprep.subr.bf16.mxu0 %v2369_v0 }
 0x199   :  { %v194_v24 = vpop.f32.mrf.mxu1 }
 0x19a   :  { %v195_v25 = vadd.f32 %v1843_v23, %v194_v24  ;;  %v2233_v23 = vld [vmem:[%s2955_s8 + $0x8] sm:$0xff]  }
 0x19b   :  { %v2039_v26 = vpop.f32.mrf.mxu1  ;;  %v2230_v24 = vld [vmem:[#allocation3 + $0x8] ss:$0 sps:$4 sm:$0xff]   ;;  %2074 = vmatpush3.bf16.msra.mxu0 %v2233_v23 }
 0x19c   :  { %v200_v27 = vmax.f32 %v195_v25, 0.0  ;;  %v2234_v26 = vld [vmem:[%s2955_s8] sm:$0xff]   ;;  %2075 = vmatprep.subr.bf16.mxu0 %v2369_v0 }
 0x19d   :  { %v197_v28 = vpop.f32.mrf.mxu1 }
 0x19e   :  { %v205_v29 = vpack.c.bf16 %v200_v27, %v200_v27 }
 0x19f   :  { %v2040_v30 = vpop.f32.mrf.mxu1  ;;  %2076 = vmatpush3.bf16.msra.mxu0 %v2234_v26  ;;  %v2665_v26 = vld [vmem:[%s2957_s11] ss:$0 sm:$0xff] }
 0x1a0   :  { %2046 = vmatmul.mubr.msk.bf16.vlgmr.msra.gmra.mxu1 %vm156_vm2, %v205_v29  ;;  %2089 = vmatprep.subr.bf16.mxu0 %v2369_v0 }
 0x1a1   :  { %2065 = vmatprep.mubr.msk.bf16.mxu1 %vm2370_vm0, %v2369_v0  ;;  %2058 = vmatpush3.bf16.msra.mxu1 %v2226_v54 }
 0x1a2   :  { %2059 = vmatprep.subr.bf16.mxu1 %v2369_v0 }
 0x1a5   :  { %2060 = vmatpush3.bf16.msra.mxu1 %v2227_v55 }
 0x1a6   :  { %2061 = vmatprep.subr.bf16.mxu1 %v2369_v0 }
 0x1a9   :  { %2062 = vmatpush3.bf16.msra.mxu1 %v2228_v56 }
 0x1aa   :  { %2063 = vmatprep.subr.bf16.mxu1 %v2369_v0 }
 0x1ad   :  { %2064 = vmatpush3.bf16.msra.mxu1 %v2229_v59 }
 0x1ae   :  { %2081 = vmatprep.subr.bf16.mxu1 %v2369_v0 }
 0x260   :  { %v262_v36 = vpop.f32.mrf.mxu1 }
 0x261   :  { %v2519_v37 = vadd.f32 %v1847_v35, %v262_v36  ;;  %v2603_v35 = vld [vmem:[%s2953_s9 + $0x2] ss:$0 sm:$0xff] }
 0x262   :  { %v2047_v38 = vpop.f32.mrf.mxu1 }
 0x263   :  { %v351_v39 = vadd.f32 %v345_v31, %v2519_v37  ;;  %v2235_v31 = vld [vmem:[%s2949_s6 + $0x8] sm:$0xff]  }
 0x264   :  { %v265_v40 = vpop.f32.mrf.mxu1 }
 0x265   :  { %2273 = vtanh.f32 %v351_v39  ;;  %v1856_v44 = vmul.f32 -1.442695, %v351_v39 }
 0x266   :  { %v2048_v41 = vpop.f32.mrf.mxu1 }
 0x267   :  { %2275 = vpow2.f32 %v1856_v44 }
 0x272   :  { %v2274_v42 = vpop.eup %2273 }
 0x273   :  { %365 = vrot.lane.b32.xlu0 %v2274_v42, %s2372_s4 }
 0x274   :  { %v2276_v45 = vpop.eup %2275 }
 0x275   :  { %v355_v46 = vadd.f32 1.0, %v2276_v45 }
 0x277   :  { %360 = vrot.lane.b32.xlu0 %v282_v43, %s2372_s4  ;;  %2277 = vrcp.f32 %v355_v46 }
 0x284   :  { %v2278_v47 = vpop.eup %2277 }
 0x2e5   :  { %v366_v48 = vpop.permute.xlu0 %365 }
 0x2e6   :  { %v368_v49 = vmul.f32 %v2278_v47, %v366_v48  ;;  %v290_v48 = vld [vmem:[#allocation4 + $0x10] sm:$0xff] }
 0x2e8   :  { %370 = vrot.lane.b32.xlu1 %v368_v49, %s2372_s4 }
 0x2e9   :  { %v361_v50 = vpop.permute.xlu0 %360 }
 0x2ea   :  { %v363_v51 = vmul.f32 %v2278_v47, %v361_v50 }
 0x35a   :  { %v371_v52 = vpop.permute.xlu1 %370 }
 0x35b   :  { %v2525_v53 = vadd.f32 %v371_v52, %v363_v51 }
 0x35d   :  { %2279 = vtanh.f32 %v2525_v53 }
 0x36a   :  { %v2280_v58 = vpop.eup %2279 }
 0x36b   :  { %376 = vrot.lane.b32.xlu1 %v2280_v58, %s2372_s4 }
 0x36f   :  { %387 = vrot.lane.b32.xlu1 %v2225_v57, %s2372_s4 }
 0x373   :  { %481 = vrot.lane.b32.xlu1 %v286_v60, %s2372_s4 }
 0x3dd   :  { %v377_v61 = vpop.permute.xlu1 %376 }
 0x3de   :  { %v379_v62 = vmul.f32 %v2278_v47, %v377_v61 }
 0x3e0   :  { %v380_v63 = vpack.c.bf16 %v379_v62, %v379_v62 }
 0x3e1   :  { %v388_v1 = vpop.permute.xlu1 %387 }
 0x3e2   :  { %382 = vrot.lane.b32.xlu0 %v380_v63, %s2373_s1 }
 0x3e5   :  { %v482_v17 = vpop.permute.xlu1 %481 }
 0x454   :  { %v383_v2 = vpop.permute.xlu0 %382 }
 0x455   :  { %v391_v3 = vsel %vm156_vm2, %v383_v2, %v388_v1 }
 0x456   :  { %2066 = vmatmul.mubr.msk.bf16.vlgmr.msra.gmra.mxu1 %vm87_vm1, %v391_v3 }
 0x457   :  { %2085 = vmatprep.mubr.msk.bf16.mxu1 %vm2370_vm0, %v2369_v0 }
 0x516   :  { %v467_v5 = vpop.f32.mrf.mxu1 }
 0x517   :  { %v468_v6 = vadd.f32 %v2555_v4, %v467_v5 }
 0x518   :  { %v2067_v7 = vpop.f32.mrf.mxu1 }
 0x519   :  { %2281 = vtanh.f32 %v468_v6  ;;  %v1864_v11 = vmul.f32 -1.442695, %v468_v6 }
 0x51a   :  { %v470_v8 = vpop.f32.mrf.mxu1 }
 0x51b   :  { %2283 = vpow2.f32 %v1864_v11 }
 0x51c   :  { %v2068_v9 = vpop.f32.mrf.mxu1 }
 0x51d   :  { %v2237_v9 = vld [vmem:[%s2956_s10 + $0x8] sm:$0xff]  }
 0x51e   :  { %2082 = vmatpush3.bf16.msra.mxu1 %v2237_v9 }
 0x51f   :  { %2083 = vmatprep.subr.bf16.mxu1 %v2369_v0 }
 0x526   :  { %v2282_v10 = vpop.eup %2281 }
 0x527   :  { %486 = vrot.lane.b32.xlu0 %v2282_v10, %s2372_s4  ;;  %v2238_v10 = vld [vmem:[%s2956_s10] sm:$0xff]  }
 0x528   :  { %v2284_v12 = vpop.eup %2283  ;;  %2084 = vmatpush3.bf16.msra.mxu1 %v2238_v10 }
 0x529   :  { %v476_v13 = vadd.f32 1.0, %v2284_v12  ;;  %2097 = vmatprep.subr.bf16.mxu1 %v2369_v0 }
 0x52b   :  { %2285 = vrcp.f32 %v476_v13 }
 0x538   :  { %v2286_v14 = vpop.eup %2285 }
 0x539   :  { %v484_v18 = vmul.f32 %v2286_v14, %v482_v17  ;;  %v2239_v17 = vld [vmem:[%s2954_s7 + $0x18] sm:$0xff]  }
 0x599   :  { %v487_v15 = vpop.permute.xlu0 %486 }
 0x59a   :  { %v489_v16 = vmul.f32 %v2286_v14, %v487_v15 }
 0x59c   :  { %491 = vrot.lane.b32.xlu0 %v489_v16, %s2372_s4 }
 0x60e   :  { %v492_v19 = vpop.permute.xlu0 %491 }
 0x60f   :  { %v2560_v20 = vadd.f32 %v492_v19, %v484_v18  ;;  %v2240_v19 = vld [vmem:[%s2954_s7 + $0x10] sm:$0xff]  }
 0x611   :  { %2287 = vtanh.f32 %v2560_v20 }
 0x61e   :  { %v2288_v25 = vpop.eup %2287 }
 0x61f   :  { %497 = vrot.lane.b32.xlu1 %v2288_v25, %s2372_s4 }
 0x623   :  { %508 = vrot.lane.b32.xlu1 %v2230_v24, %s2372_s4 }
 0x691   :  { %v498_v27 = vpop.permute.xlu1 %497 }
 0x692   :  { %v500_v28 = vmul.f32 %v2286_v14, %v498_v27 }
 0x694   :  { %v2581_v29 = vpack.c.bf16 %v500_v28, %v500_v28 }
 0x695   :  { %v509_v30 = vpop.permute.xlu1 %508 }
 0x696   :  { %503 = vrot.lane.b32.xlu0 %v2581_v29, %s2373_s1 }
 0x708   :  { %v504_v32 = vpop.permute.xlu0 %503 }
 0x709   :  { %v512_v33 = vsel %vm156_vm2, %v504_v32, %v509_v30 }
 0x70a   :  { %2078 = vmatmul.mubr.msk.bf16.vlgmr.msra.gmra.mxu0 %vm87_vm1, %v512_v33 }
 0x70b   :  { %2090 = vmatpush3.bf16.msra.mxu0 %v2235_v31  ;;  %2093 = vmatprep.mubr.msk.bf16.mxu0 %vm2370_vm0, %v2369_v0 }
 0x70c   :  { %2091 = vmatprep.subr.bf16.mxu0 %v2369_v0 }
 0x70f   :  { %2092 = vmatpush3.bf16.msra.mxu0 %v2236_v34 }
 0x710   :  { %2109 = vmatprep.subr.bf16.mxu0 %v2369_v0 }
 0x712   :  { %2094 = vmatmul.mubr.msk.bf16.vlgmr.msra.gmra.mxu0 %vm156_vm2, %v383_v2 }
 0x713   :  { %2117 = vmatprep.mubr.msk.bf16.mxu0 %vm2370_vm0, %v2369_v0 }
 0x7ca   :  { %v587_v36 = vpop.f32.mrf.mxu0 }
 0x7cb   :  { %v588_v38 = vadd.f32 %v2603_v35, %v587_v36 }
 0x7cc   :  { %v2079_v39 = vpop.f32.mrf.mxu0 }
 0x7cd   :  { %2289 = vtanh.f32 %v588_v38  ;;  %v1872_v50 = vmul.f32 -1.442695, %v588_v38 }
 0x7ce   :  { %v590_v40 = vpop.f32.mrf.mxu0 }
 0x7d0   :  { %v2080_v41 = vpop.f32.mrf.mxu0 }
 0x7d2   :  { %v744_v42 = vpop.f32.mrf.mxu0 }
 0x7d3   :  { %v750_v43 = vadd.f32 %v744_v42, %v2519_v37 }
 0x7d4   :  { %v2095_v44 = vpop.f32.mrf.mxu0 }
 0x7d5   :  { %2291 = vtanh.f32 %v750_v43  ;;  %v1880_v51 = vmul.f32 -1.442695, %v750_v43 }
 0x7d6   :  { %v747_v45 = vpop.f32.mrf.mxu0  ;;  %2293 = vpow2.f32 %v1872_v50  ;;  %v2244_v50 = vld [vmem:[%s2955_s8 + $0x10] sm:$0xff]  }
 0x7d7   :  { %2295 = vpow2.f32 %v1880_v51 }
 0x7d8   :  { %v2096_v46 = vpop.f32.mrf.mxu0 }
 0x7da   :  { %v2290_v47 = vpop.eup %2289 }
 0x7db   :  { %606 = vrot.lane.b32.xlu0 %v2290_v47, %s2372_s4 }
 0x7df   :  { %601 = vrot.lane.b32.xlu0 %v290_v48, %s2372_s4 }
 0x7e2   :  { %v2292_v49 = vpop.eup %2291 }
 0x7e3   :  { %760 = vrot.lane.b32.xlu1 %v2292_v49, %s2372_s4  ;;  %v2294_v52 = vpop.eup %2293  ;;  %v2243_v49 = vld [vmem:[%s2955_s8 + $0x18] sm:$0xff]  }
 0x7e4   :  { %v596_v54 = vadd.f32 1.0, %v2294_v52  ;;  %v2296_v55 = vpop.eup %2295  ;;  %2110 = vmatpush3.bf16.msra.mxu0 %v2243_v49  ;;  %v2246_v52 = vld [vmem:[%s2955_s8] sm:$0xff]  }
 0x7e5   :  { %v754_v56 = vadd.f32 1.0, %v2296_v55  ;;  %2111 = vmatprep.subr.bf16.mxu0 %v2369_v0 }
 0x7e6   :  { %2297 = vrcp.f32 %v596_v54 }
 0x7e7   :  { %2299 = vrcp.f32 %v754_v56 }
 0x7e8   :  { %2112 = vmatpush3.bf16.msra.mxu0 %v2244_v50 }
 0x7e9   :  { %2113 = vmatprep.subr.bf16.mxu0 %v2369_v0 }
 0x7f3   :  { %v2298_v57 = vpop.eup %2297 }
 0x7f4   :  { %v2300_v60 = vpop.eup %2299 }
 0x7f5   :  { %v758_v5 = vmul.f32 %v2300_v60, %v2525_v53 }
 0x84d   :  { %v607_v58 = vpop.permute.xlu0 %606 }
 0x84e   :  { %v609_v59 = vmul.f32 %v2298_v57, %v607_v58 }
 0x850   :  { %611 = vrot.lane.b32.xlu1 %v609_v59, %s2372_s4 }
 0x851   :  { %v602_v63 = vpop.permute.xlu0 %601 }
 0x852   :  { %v604_v1 = vmul.f32 %v2298_v57, %v602_v63 }
 0x855   :  { %v761_v61 = vpop.permute.xlu1 %760 }
 0x856   :  { %v763_v62 = vmul.f32 %v2300_v60, %v761_v61  ;;  %v2248_v61 = vld [vmem:[%s2949_s6] sm:$0xff]  }
 0x858   :  { %765 = vrot.lane.b32.xlu0 %v763_v62, %s2372_s4 }
 0x8c2   :  { %v612_v2 = vpop.permute.xlu1 %611 }
 0x8c3   :  { %v2612_v3 = vadd.f32 %v612_v2, %v604_v1 }
 0x8c5   :  { %2301 = vtanh.f32 %v2612_v3 }
 0x8ca   :  { %v766_v6 = vpop.permute.xlu0 %765 }
 0x8cb   :  { %v2616_v7 = vadd.f32 %v766_v6, %v758_v5 }
 0x8cd   :  { %2303 = vtanh.f32 %v2616_v7 }
 0x8d2   :  { %v2302_v8 = vpop.eup %2301 }
 0x8d3   :  { %617 = vrot.lane.b32.xlu1 %v2302_v8, %s2372_s4 }
 0x8da   :  { %v2304_v53 = vpop.eup %2303 }
 0x8db   :  { %771 = vrot.lane.b32.xlu0 %v2304_v53, %s2372_s4 }
 0x945   :  { %v618_v11 = vpop.permute.xlu1 %617 }
 0x946   :  { %v620_v12 = vmul.f32 %v2298_v57, %v618_v11  ;;  %v2247_v57 = vld [vmem:[%s2949_s6 + $0x8] sm:$0xff]  }
 0x948   :  { %v2629_v13 = vpack.c.bf16 %v620_v12, %v620_v12 }
 0x94a   :  { %634 = vrot.lane.b32.xlu1 %v2629_v13, %s2373_s1 }
 0x94d   :  { %v772_v14 = vpop.permute.xlu0 %771 }
 0x94e   :  { %v774_v15 = vmul.f32 %v2300_v60, %v772_v14  ;;  %779 = vrot.lane.b32.xlu1 %v2581_v29, %s2374_s13 }
 0x950   :  { %v775_v16 = vpack.c.bf16 %v774_v15, %v774_v15 }
 0x952   :  { %777 = vrot.lane.b32.xlu0 %v775_v16, %s2373_s1 }
 0x9bc   :  { %v635_v18 = vpop.permute.xlu1 %634 }
 0x9bd   :  { %2086 = vmatmul.mubr.msk.bf16.vlgmr.msra.gmra.mxu1 %vm156_vm2, %v635_v18 }
 0x9be   :  { %2098 = vmatpush3.bf16.msra.mxu1 %v2239_v17  ;;  %2105 = vmatprep.mubr.msk.bf16.mxu1 %vm2370_vm0, %v2369_v0 }
 0x9bf   :  { %2099 = vmatprep.subr.bf16.mxu1 %v2369_v0 }
 0x9c0   :  { %v780_v24 = vpop.permute.xlu1 %779 }
 0x9c2   :  { %2100 = vmatpush3.bf16.msra.mxu1 %v2240_v19 }
 0x9c3   :  { %2101 = vmatprep.subr.bf16.mxu1 %v2369_v0 }
 0x9c4   :  { %v2654_v23 = vpop.permute.xlu0 %777 }
 0x9c5   :  { %v783_v25 = vsel %vm156_vm2, %v2654_v23, %v780_v24 }
 0x9c6   :  { %2102 = vmatpush3.bf16.msra.mxu1 %v2241_v21 }
 0x9c7   :  { %2103 = vmatprep.subr.bf16.mxu1 %v2369_v0 }
 0x9ca   :  { %2104 = vmatpush3.bf16.msra.mxu1 %v2242_v22 }
 0x9cb   :  { %2121 = vmatprep.subr.bf16.mxu1 %v2369_v0 }
 0x9cd   :  { %2106 = vmatmul.mubr.msk.bf16.vlgmr.msra.gmra.mxu1 %vm87_vm1, %v783_v25 }
 0x9ce   :  { %2125 = vmatprep.mubr.msk.bf16.mxu1 %vm2370_vm0, %v2369_v0 }
 0xa7d   :  { %v685_v27 = vpop.f32.mrf.mxu1 }
 0xa7e   :  { %v686_v28 = vadd.f32 %v2665_v26, %v685_v27 }
 0xa7f   :  { %v2087_v29 = vpop.f32.mrf.mxu1 }
 0xa80   :  { %691 = vst [vmem:[%s2958_s12] sm:$0xff] %v686_v28 }
 0xa81   :  { %v688_v30 = vpop.f32.mrf.mxu1 }
 0xa83   :  { %v2088_v31 = vpop.f32.mrf.mxu1 }
 0xa8d   :  { %v852_v32 = vpop.f32.mrf.mxu1 }
 0xa8e   :  { %v853_v33 = vadd.f32 %v2555_v4, %v852_v32 }
 0xa8f   :  { %v2107_v34 = vpop.f32.mrf.mxu1 }
 0xa90   :  { %2305 = vtanh.f32 %v853_v33  ;;  %v1886_v40 = vmul.f32 -1.442695, %v853_v33  ;;  %v2249_v34 = vld [vmem:[%s2956_s10 + $0x8] sm:$0xff]  }
 0xa91   :  { %v855_v36 = vpop.f32.mrf.mxu1  ;;  %2122 = vmatpush3.bf16.msra.mxu1 %v2249_v34 }
 0xa92   :  { %2307 = vpow2.f32 %v1886_v40  ;;  %2123 = vmatprep.subr.bf16.mxu1 %v2369_v0 }
 0xa93   :  { %v2108_v38 = vpop.f32.mrf.mxu1 }
 0xa9d   :  { %v2306_v39 = vpop.eup %2305 }
 0xa9e   :  { %867 = vrot.lane.b32.xlu0 %v2306_v39, %s2372_s4 }
 0xa9f   :  { %v2308_v41 = vpop.eup %2307 }
 0xaa0   :  { %v861_v42 = vadd.f32 1.0, %v2308_v41 }
 0xaa2   :  { %2309 = vrcp.f32 %v861_v42 }
 0xaaf   :  { %v2310_v43 = vpop.eup %2309 }
 0xab0   :  { %v865_v46 = vmul.f32 %v2310_v43, %v2560_v20  ;;  %v2245_v20 = vld [vmem:[%s2955_s8 + $0x8] sm:$0xff]  }
 0xab1   :  { %2114 = vmatpush3.bf16.msra.mxu0 %v2245_v20 }
 0xab2   :  { %2115 = vmatprep.subr.bf16.mxu0 %v2369_v0 }
 0xab5   :  { %2116 = vmatpush3.bf16.msra.mxu0 %v2246_v52 }
 0xab6   :  { %2129 = vmatprep.subr.bf16.mxu0 %v2369_v0 }
 0xb10   :  { %v868_v44 = vpop.permute.xlu0 %867 }
 0xb11   :  { %v870_v45 = vmul.f32 %v2310_v43, %v868_v44 }
 0xb13   :  { %872 = vrot.lane.b32.xlu1 %v870_v45, %s2372_s4  ;;  %v2252_v45 = vld [vmem:[%s2954_s7 + $0x10] sm:$0xff]  }
 0xb85   :  { %v873_v47 = vpop.permute.xlu1 %872 }
 0xb86   :  { %v2675_v48 = vadd.f32 %v873_v47, %v865_v46  ;;  %v2253_v46 = vld [vmem:[%s2954_s7 + $0x8] sm:$0xff]   ;;  %v2254_v47 = vld [vmem:[%s2954_s7] sm:$0xff]  }
 0xb88   :  { %2311 = vtanh.f32 %v2675_v48 }
 0xb95   :  { %v2312_v51 = vpop.eup %2311 }
 0xb96   :  { %878 = vrot.lane.b32.xlu0 %v2312_v51, %s2372_s4 }
 0xb9a   :  { %886 = vrot.lane.b32.xlu0 %v2629_v13, %s2374_s13 }
 0xc08   :  { %v879_v54 = vpop.permute.xlu0 %878 }
 0xc09   :  { %v881_v55 = vmul.f32 %v2310_v43, %v879_v54  ;;  %v2251_v43 = vld [vmem:[%s2954_s7 + $0x18] sm:$0xff]  }
 0xc0b   :  { %v2697_v56 = vpack.c.bf16 %v881_v55, %v881_v55 }
 0xc0c   :  { %v887_v58 = vpop.permute.xlu0 %886 }
 0xc0d   :  { %884 = vrot.lane.b32.xlu1 %v2697_v56, %s2373_s1 }
 0xc7f   :  { %v885_v59 = vpop.permute.xlu1 %884 }
 0xc80   :  { %v890_v60 = vsel %vm156_vm2, %v885_v59, %v887_v58 }
 0xc81   :  { %2118 = vmatmul.mubr.msk.bf16.vlgmr.msra.gmra.mxu0 %vm87_vm1, %v890_v60 }
 0xc82   :  { %2130 = vmatpush3.bf16.msra.mxu0 %v2247_v57  ;;  %2133 = vmatprep.mubr.msk.bf16.mxu0 %vm2370_vm0, %v2369_v0 }
 0xc83   :  { %2131 = vmatprep.subr.bf16.mxu0 %v2369_v0 }
 0xc86   :  { %2132 = vmatpush3.bf16.msra.mxu0 %v2248_v61 }
 0xc87   :  { %2149 = vmatprep.subr.bf16.mxu0 %v2369_v0 }
 0xc89   :  { %2134 = vmatmul.mubr.msk.bf16.vlgmr.msra.gmra.mxu0 %vm156_vm2, %v2654_v23 }
 0xc8a   :  { %2157 = vmatprep.mubr.msk.bf16.mxu0 %vm2370_vm0, %v2369_v0 }
 0xd41   :  { %v959_v62 = vpop.f32.mrf.mxu0 }
 0xd42   :  { %v960_v63 = vadd.f32 %v2603_v35, %v959_v62 }
 0xd43   :  { %v2119_v1 = vpop.f32.mrf.mxu0 }
 0xd44   :  { %2313 = vtanh.f32 %v960_v63  ;;  %v1892_v13 = vmul.f32 -1.442695, %v960_v63 }
 0xd45   :  { %v962_v2 = vpop.f32.mrf.mxu0 }
 0xd47   :  { %v2120_v5 = vpop.f32.mrf.mxu0 }
 0xd49   :  { %v1113_v6 = vpop.f32.mrf.mxu0 }
 0xd4a   :  { %v1119_v8 = vadd.f32 %v1113_v6, %v2519_v37 }
 0xd4b   :  { %v2135_v9 = vpop.f32.mrf.mxu0 }
 0xd4c   :  { %2315 = vtanh.f32 %v1119_v8  ;;  %v1901_v14 = vmul.f32 -1.442695, %v1119_v8 }
 0xd4d   :  { %v1116_v10 = vpop.f32.mrf.mxu0  ;;  %2317 = vpow2.f32 %v1892_v13 }
 0xd4e   :  { %2319 = vpow2.f32 %v1901_v14  ;;  %v2258_v14 = vld [vmem:[%s2955_s8] sm:$0xff]  }
 0xd4f   :  { %v2136_v53 = vpop.f32.mrf.mxu0 }
 0xd51   :  { %v2314_v11 = vpop.eup %2313 }
 0xd52   :  { %974 = vrot.lane.b32.xlu1 %v2314_v11, %s2372_s4  ;;  %v2255_v11 = vld [vmem:[%s2955_s8 + $0x18] sm:$0xff]  }
 0xd53   :  { %2150 = vmatpush3.bf16.msra.mxu0 %v2255_v11 }
 0xd54   :  { %2151 = vmatprep.subr.bf16.mxu0 %v2369_v0 }
 0xd59   :  { %v2316_v12 = vpop.eup %2315 }
 0xd5a   :  { %1129 = vrot.lane.b32.xlu0 %v2316_v12, %s2372_s4  ;;  %v2318_v15 = vpop.eup %2317  ;;  %v2256_v12 = vld [vmem:[%s2955_s8 + $0x10] sm:$0xff]  }
 0xd5b   :  { %v968_v16 = vadd.f32 1.0, %v2318_v15  ;;  %v2320_v17 = vpop.eup %2319  ;;  %2152 = vmatpush3.bf16.msra.mxu0 %v2256_v12 }
 0xd5c   :  { %v1123_v18 = vadd.f32 1.0, %v2320_v17  ;;  %2153 = vmatprep.subr.bf16.mxu0 %v2369_v0 }
 0xd5d   :  { %2321 = vrcp.f32 %v968_v16 }
 0xd5e   :  { %2323 = vrcp.f32 %v1123_v18  ;;  %v2259_v18 = vld [vmem:[%s2949_s6 + $0x8] sm:$0xff]  }
 0xd6a   :  { %v2322_v19 = vpop.eup %2321 }
 0xd6b   :  { %v2324_v23 = vpop.eup %2323  ;;  %v972_v27 = vmul.f32 %v2322_v19, %v2612_v3  ;;  %v2250_v3 = vld [vmem:[%s2956_s10] sm:$0xff]  }
 0xd6c   :  { %v1127_v30 = vmul.f32 %v2324_v23, %v2616_v7  ;;  %2124 = vmatpush3.bf16.msra.mxu1 %v2250_v3 }
 0xd6d   :  { %2137 = vmatprep.subr.bf16.mxu1 %v2369_v0 }
 0xdc4   :  { %v975_v21 = vpop.permute.xlu1 %974 }
 0xdc5   :  { %v977_v22 = vmul.f32 %v2322_v19, %v975_v21 }
 0xdc7   :  { %979 = vrot.lane.b32.xlu1 %v977_v22, %s2372_s4 }
 0xdcc   :  { %v1130_v24 = vpop.permute.xlu0 %1129 }
 0xdcd   :  { %v1132_v25 = vmul.f32 %v2324_v23, %v1130_v24 }
 0xdcf   :  { %1134 = vrot.lane.b32.xlu0 %v1132_v25, %s2372_s4 }
 0xe39   :  { %v980_v28 = vpop.permute.xlu1 %979 }
 0xe3a   :  { %v2724_v29 = vadd.f32 %v980_v28, %v972_v27 }
 0xe3c   :  { %2325 = vtanh.f32 %v2724_v29 }
 0xe41   :  { %v1135_v31 = vpop.permute.xlu0 %1134 }
 0xe42   :  { %v2728_v32 = vadd.f32 %v1135_v31, %v1127_v30 }
 0xe44   :  { %2327 = vtanh.f32 %v2728_v32 }
 0xe49   :  { %v2326_v33 = vpop.eup %2325 }
 0xe4a   :  { %985 = vrot.lane.b32.xlu1 %v2326_v33, %s2372_s4 }
 0xe51   :  { %v2328_v7 = vpop.eup %2327 }
 0xe52   :  { %1140 = vrot.lane.b32.xlu0 %v2328_v7, %s2372_s4 }
 0xebc   :  { %v986_v36 = vpop.permute.xlu1 %985 }
 0xebd   :  { %v988_v38 = vmul.f32 %v2322_v19, %v986_v36 }
 0xebf   :  { %v2741_v39 = vpack.c.bf16 %v988_v38, %v988_v38 }
 0xec1   :  { %1002 = vrot.lane.b32.xlu1 %v2741_v39, %s2373_s1 }
 0xec4   :  { %v1141_v40 = vpop.permute.xlu0 %1140 }
 0xec5   :  { %v1143_v41 = vmul.f32 %v2324_v23, %v1141_v40  ;;  %1148 = vrot.lane.b32.xlu1 %v2697_v56, %s2374_s13  ;;  %v2260_v23 = vld [vmem:[%s2949_s6] sm:$0xff]  }
 0xec7   :  { %v1144_v42 = vpack.c.bf16 %v1143_v41, %v1143_v41 }
 0xec9   :  { %1146 = vrot.lane.b32.xlu0 %v1144_v42, %s2373_s1 }
 0xf33   :  { %v1003_v44 = vpop.permute.xlu1 %1002 }
 0xf34   :  { %2126 = vmatmul.mubr.msk.bf16.vlgmr.msra.gmra.mxu1 %vm156_vm2, %v1003_v44 }
 0xf35   :  { %2138 = vmatpush3.bf16.msra.mxu1 %v2251_v43  ;;  %2145 = vmatprep.mubr.msk.bf16.mxu1 %vm2370_vm0, %v2369_v0 }
 0xf36   :  { %2139 = vmatprep.subr.bf16.mxu1 %v2369_v0 }
 0xf37   :  { %v1149_v50 = vpop.permute.xlu1 %1148 }
 0xf39   :  { %2140 = vmatpush3.bf16.msra.mxu1 %v2252_v45 }
 0xf3a   :  { %2141 = vmatprep.subr.bf16.mxu1 %v2369_v0 }
 0xf3b   :  { %v2766_v49 = vpop.permute.xlu0 %1146 }
 0xf3c   :  { %v1152_v20 = vsel %vm156_vm2, %v2766_v49, %v1149_v50 }
 0xf3d   :  { %2142 = vmatpush3.bf16.msra.mxu1 %v2253_v46 }
 0xf3e   :  { %2143 = vmatprep.subr.bf16.mxu1 %v2369_v0 }
 0xf41   :  { %2144 = vmatpush3.bf16.msra.mxu1 %v2254_v47 }
 0xf42   :  { %2161 = vmatprep.subr.bf16.mxu1 %v2369_v0 }
 0xf44   :  { %2146 = vmatmul.mubr.msk.bf16.vlgmr.msra.gmra.mxu1 %vm87_vm1, %v1152_v20 }
 0xf45   :  { %2165 = vmatprep.mubr.msk.bf16.mxu1 %vm2370_vm0, %v2369_v0 }
 0xff4   :  { %v1053_v51 = vpop.f32.mrf.mxu1 }
 0xff5   :  { %v1054_v52 = vadd.f32 %v2665_v26, %v1053_v51 }
 0xff6   :  { %v2127_v54 = vpop.f32.mrf.mxu1 }
 0xff7   :  { %1897 = vst [vmem:[%s2958_s12 + $0x8] sm:$0xff] %v1054_v52 }
 0xff8   :  { %v1056_v55 = vpop.f32.mrf.mxu1 }
 0xffa   :  { %v2128_v56 = vpop.f32.mrf.mxu1 }
0x1004   :  { %v1221_v57 = vpop.f32.mrf.mxu1 }
0x1005   :  { %v1222_v58 = vadd.f32 %v2555_v4, %v1221_v57 }
0x1006   :  { %v2147_v59 = vpop.f32.mrf.mxu1 }
0x1007   :  { %2329 = vtanh.f32 %v1222_v58  ;;  %v1907_v63 = vmul.f32 -1.442695, %v1222_v58  ;;  %v2261_v58 = vld [vmem:[%s2956_s10 + $0x8] sm:$0xff]  }
0x1008   :  { %v1224_v60 = vpop.f32.mrf.mxu1  ;;  %2162 = vmatpush3.bf16.msra.mxu1 %v2261_v58 }
0x1009   :  { %2331 = vpow2.f32 %v1907_v63  ;;  %2163 = vmatprep.subr.bf16.mxu1 %v2369_v0 }
0x100a   :  { %v2148_v61 = vpop.f32.mrf.mxu1 }
0x1014   :  { %v2330_v62 = vpop.eup %2329 }
0x1015   :  { %1236 = vrot.lane.b32.xlu0 %v2330_v62, %s2372_s4 }
0x1016   :  { %v2332_v1 = vpop.eup %2331 }
0x1017   :  { %v1230_v2 = vadd.f32 1.0, %v2332_v1 }
0x1019   :  { %2333 = vrcp.f32 %v1230_v2  ;;  %v2263_v2 = vld [vmem:[%s2954_s7 + $0x18] sm:$0xff]  }
0x1026   :  { %v2334_v5 = vpop.eup %2333 }
0x1027   :  { %v1234_v9 = vmul.f32 %v2334_v5, %v2675_v48  ;;  %v2257_v48 = vld [vmem:[%s2955_s8 + $0x8] sm:$0xff]  }
0x1028   :  { %2154 = vmatpush3.bf16.msra.mxu0 %v2257_v48 }
0x1029   :  { %2155 = vmatprep.subr.bf16.mxu0 %v2369_v0 }
0x102c   :  { %2156 = vmatpush3.bf16.msra.mxu0 %v2258_v14 }
0x102d   :  { %2169 = vmatprep.subr.bf16.mxu0 %v2369_v0 }
0x1087   :  { %v1237_v6 = vpop.permute.xlu0 %1236 }
0x1088   :  { %v1239_v8 = vmul.f32 %v2334_v5, %v1237_v6  ;;  %v2264_v6 = vld [vmem:[%s2954_s7 + $0x10] sm:$0xff]  }
0x108a   :  { %1241 = vrot.lane.b32.xlu1 %v1239_v8, %s2372_s4  ;;  %v2265_v8 = vld [vmem:[%s2954_s7 + $0x8] sm:$0xff]  }
0x10fc   :  { %v1242_v10 = vpop.permute.xlu1 %1241 }
0x10fd   :  { %v2782_v53 = vadd.f32 %v1242_v10, %v1234_v9  ;;  %v2266_v9 = vld [vmem:[%s2954_s7] sm:$0xff]  }
0x10ff   :  { %2335 = vtanh.f32 %v2782_v53 }
0x110c   :  { %v2336_v13 = vpop.eup %2335 }
0x110d   :  { %1247 = vrot.lane.b32.xlu0 %v2336_v13, %s2372_s4 }
0x1111   :  { %1255 = vrot.lane.b32.xlu0 %v2741_v39, %s2374_s13 }
0x117f   :  { %v1248_v15 = vpop.permute.xlu0 %1247 }
0x1180   :  { %v1250_v16 = vmul.f32 %v2334_v5, %v1248_v15 }
0x1182   :  { %v2804_v17 = vpack.c.bf16 %v1250_v16, %v1250_v16 }
0x1183   :  { %v1256_v19 = vpop.permute.xlu0 %1255 }
0x1184   :  { %1253 = vrot.lane.b32.xlu1 %v2804_v17, %s2373_s1 }
0x11f6   :  { %v1254_v21 = vpop.permute.xlu1 %1253 }
0x11f7   :  { %v1259_v22 = vsel %vm156_vm2, %v1254_v21, %v1256_v19 }
0x11f8   :  { %2158 = vmatmul.mubr.msk.bf16.vlgmr.msra.gmra.mxu0 %vm87_vm1, %v1259_v22 }
0x11f9   :  { %2170 = vmatpush3.bf16.msra.mxu0 %v2259_v18  ;;  %2173 = vmatprep.mubr.msk.bf16.mxu0 %vm2370_vm0, %v2369_v0 }
0x11fa   :  { %2171 = vmatprep.subr.bf16.mxu0 %v2369_v0 }
0x11fd   :  { %2172 = vmatpush3.bf16.msra.mxu0 %v2260_v23 }
0x11fe   :  { %2189 = vmatprep.subr.bf16.mxu0 %v2369_v0 }
0x1200   :  { %2174 = vmatmul.mubr.msk.bf16.vlgmr.msra.gmra.mxu0 %vm156_vm2, %v2766_v49 }
0x1201   :  { %2197 = vmatprep.mubr.msk.bf16.mxu0 %vm2370_vm0, %v2369_v0 }
0x12b8   :  { %v1328_v24 = vpop.f32.mrf.mxu0 }
0x12b9   :  { %v1329_v25 = vadd.f32 %v2603_v35, %v1328_v24 }
0x12ba   :  { %v2159_v27 = vpop.f32.mrf.mxu0 }
0x12bb   :  { %2337 = vtanh.f32 %v1329_v25  ;;  %v1913_v39 = vmul.f32 -1.442695, %v1329_v25 }
0x12bc   :  { %v1331_v28 = vpop.f32.mrf.mxu0 }
0x12be   :  { %v2160_v30 = vpop.f32.mrf.mxu0 }
0x12c0   :  { %v1482_v31 = vpop.f32.mrf.mxu0 }
0x12c1   :  { %v1488_v33 = vadd.f32 %v1482_v31, %v2519_v37 }
0x12c2   :  { %v2175_v34 = vpop.f32.mrf.mxu0 }
0x12c3   :  { %2339 = vtanh.f32 %v1488_v33  ;;  %v1922_v40 = vmul.f32 -1.442695, %v1488_v33 }
0x12c4   :  { %v1485_v3 = vpop.f32.mrf.mxu0  ;;  %2341 = vpow2.f32 %v1913_v39 }
0x12c5   :  { %2343 = vpow2.f32 %v1922_v40  ;;  %v2267_v3 = vld [vmem:[%s2955_s8 + $0x18] sm:$0xff]  }
0x12c6   :  { %v2176_v7 = vpop.f32.mrf.mxu0  ;;  %2190 = vmatpush3.bf16.msra.mxu0 %v2267_v3 }
0x12c7   :  { %v2268_v7 = vld [vmem:[%s2955_s8 + $0x10] sm:$0xff]   ;;  %2191 = vmatprep.subr.bf16.mxu0 %v2369_v0 }
0x12c8   :  { %v2338_v36 = vpop.eup %2337 }
0x12c9   :  { %1343 = vrot.lane.b32.xlu1 %v2338_v36, %s2372_s4 }
0x12ca   :  { %2192 = vmatpush3.bf16.msra.mxu0 %v2268_v7 }
0x12cb   :  { %2193 = vmatprep.subr.bf16.mxu0 %v2369_v0 }
0x12d0   :  { %v2340_v38 = vpop.eup %2339 }
0x12d1   :  { %1498 = vrot.lane.b32.xlu0 %v2340_v38, %s2372_s4  ;;  %v2342_v41 = vpop.eup %2341  ;;  %v2270_v38 = vld [vmem:[%s2955_s8] sm:$0xff]  }
0x12d2   :  { %v1337_v42 = vadd.f32 1.0, %v2342_v41  ;;  %v2344_v43 = vpop.eup %2343 }
0x12d3   :  { %v1492_v44 = vadd.f32 1.0, %v2344_v43 }
0x12d4   :  { %2345 = vrcp.f32 %v1337_v42 }
0x12d5   :  { %2347 = vrcp.f32 %v1492_v44 }
0x12e1   :  { %v2346_v37 = vpop.eup %2345 }
0x12e2   :  { %v2348_v47 = vpop.eup %2347  ;;  %v1341_v20 = vmul.f32 %v2346_v37, %v2724_v29  ;;  %v2262_v29 = vld [vmem:[%s2956_s10] sm:$0xff]  }
0x12e3   :  { %v1496_v54 = vmul.f32 %v2348_v47, %v2728_v32  ;;  %2164 = vmatpush3.bf16.msra.mxu1 %v2262_v29 }
0x12e4   :  { %2177 = vmatprep.subr.bf16.mxu1 %v2369_v0 }
0x133b   :  { %v1344_v45 = vpop.permute.xlu1 %1343 }
0x133c   :  { %v1346_v46 = vmul.f32 %v2346_v37, %v1344_v45 }
0x133e   :  { %1348 = vrot.lane.b32.xlu1 %v1346_v46, %s2372_s4 }
0x1343   :  { %v1499_v49 = vpop.permute.xlu0 %1498 }
0x1344   :  { %v1501_v50 = vmul.f32 %v2348_v47, %v1499_v49 }
0x1346   :  { %1503 = vrot.lane.b32.xlu0 %v1501_v50, %s2372_s4 }
0x13b0   :  { %v1349_v51 = vpop.permute.xlu1 %1348 }
0x13b1   :  { %v2831_v52 = vadd.f32 %v1349_v51, %v1341_v20 }
0x13b3   :  { %2349 = vtanh.f32 %v2831_v52 }
0x13b8   :  { %v1504_v55 = vpop.permute.xlu0 %1503 }
0x13b9   :  { %v2835_v56 = vadd.f32 %v1504_v55, %v1496_v54 }
0x13bb   :  { %2351 = vtanh.f32 %v2835_v56 }
0x13c0   :  { %v2350_v57 = vpop.eup %2349 }
0x13c1   :  { %1354 = vrot.lane.b32.xlu1 %v2350_v57, %s2372_s4 }
0x13c8   :  { %v2352_v32 = vpop.eup %2351 }
0x13c9   :  { %1509 = vrot.lane.b32.xlu0 %v2352_v32, %s2372_s4 }
0x1433   :  { %v1355_v59 = vpop.permute.xlu1 %1354 }
0x1434   :  { %v1357_v60 = vmul.f32 %v2346_v37, %v1355_v59 }
0x1436   :  { %v2848_v61 = vpack.c.bf16 %v1357_v60, %v1357_v60  ;;  %v2271_v60 = vld [vmem:[%s2956_s10 + $0x8] sm:$0xff]  }
0x1438   :  { %1371 = vrot.lane.b32.xlu1 %v2848_v61, %s2373_s1 }
0x143b   :  { %v1510_v62 = vpop.permute.xlu0 %1509 }
0x143c   :  { %v1512_v63 = vmul.f32 %v2348_v47, %v1510_v62  ;;  %1517 = vrot.lane.b32.xlu1 %v2804_v17, %s2374_s13 }
0x143e   :  { %v2854_v1 = vpack.c.bf16 %v1512_v63, %v1512_v63 }
0x1440   :  { %1515 = vrot.lane.b32.xlu0 %v2854_v1, %s2373_s1 }
0x14aa   :  { %v1372_v5 = vpop.permute.xlu1 %1371 }
0x14ab   :  { %2166 = vmatmul.mubr.msk.bf16.vlgmr.msra.gmra.mxu1 %vm156_vm2, %v1372_v5 }
0x14ac   :  { %2178 = vmatpush3.bf16.msra.mxu1 %v2263_v2  ;;  %2185 = vmatprep.mubr.msk.bf16.mxu1 %vm2370_vm0, %v2369_v0 }
0x14ad   :  { %2179 = vmatprep.subr.bf16.mxu1 %v2369_v0 }
0x14ae   :  { %v1518_v11 = vpop.permute.xlu1 %1517 }
0x14b0   :  { %2180 = vmatpush3.bf16.msra.mxu1 %v2264_v6 }
0x14b1   :  { %2181 = vmatprep.subr.bf16.mxu1 %v2369_v0 }
0x14b2   :  { %v1516_v10 = vpop.permute.xlu0 %1515 }
0x14b3   :  { %v1521_v12 = vsel %vm156_vm2, %v1516_v10, %v1518_v11 }
0x14b4   :  { %2182 = vmatpush3.bf16.msra.mxu1 %v2265_v8 }
0x14b5   :  { %2183 = vmatprep.subr.bf16.mxu1 %v2369_v0 }
0x14b8   :  { %2184 = vmatpush3.bf16.msra.mxu1 %v2266_v9 }
0x14b9   :  { %2201 = vmatprep.subr.bf16.mxu1 %v2369_v0 }
0x14bb   :  { %2186 = vmatmul.mubr.msk.bf16.vlgmr.msra.gmra.mxu1 %vm87_vm1, %v1521_v12 }
0x14bc   :  { %2205 = vmatprep.mubr.msk.bf16.mxu1 %vm2370_vm0, %v2369_v0  ;;  %2202 = vmatpush3.bf16.msra.mxu1 %v2271_v60 }
0x14bd   :  { %2203 = vmatprep.subr.bf16.mxu1 %v2369_v0 }
0x156b   :  { %v1422_v48 = vpop.f32.mrf.mxu1 }
0x156c   :  { %v1423_v13 = vadd.f32 %v2665_v26, %v1422_v48 }
0x156d   :  { %v2167_v14 = vpop.f32.mrf.mxu1 }
0x156e   :  { %1918 = vst [vmem:[%s2958_s12 + $0x10] sm:$0xff] %v1423_v13 }
0x156f   :  { %v1425_v15 = vpop.f32.mrf.mxu1 }
0x1571   :  { %v2168_v16 = vpop.f32.mrf.mxu1 }
0x157b   :  { %v1590_v17 = vpop.f32.mrf.mxu1 }
0x157c   :  { %v1591_v18 = vadd.f32 %v2555_v4, %v1590_v17 }
0x157d   :  { %v2187_v19 = vpop.f32.mrf.mxu1 }
0x157e   :  { %2353 = vtanh.f32 %v1591_v18  ;;  %v1928_v24 = vmul.f32 -1.442695, %v1591_v18 }
0x157f   :  { %v1593_v21 = vpop.f32.mrf.mxu1 }
0x1580   :  { %2355 = vpow2.f32 %v1928_v24 }
0x1581   :  { %v2188_v22 = vpop.f32.mrf.mxu1 }
0x158b   :  { %v2354_v23 = vpop.eup %2353 }
0x158c   :  { %1605 = vrot.lane.b32.xlu0 %v2354_v23, %s2372_s4 }
0x158d   :  { %v2356_v25 = vpop.eup %2355 }
0x158e   :  { %v1599_v27 = vadd.f32 1.0, %v2356_v25 }
0x1590   :  { %2357 = vrcp.f32 %v1599_v27 }
0x159d   :  { %v2358_v28 = vpop.eup %2357 }
0x159e   :  { %v1603_v33 = vmul.f32 %v2358_v28, %v2782_v53  ;;  %v2269_v53 = vld [vmem:[%s2955_s8 + $0x8] sm:$0xff]  }
0x159f   :  { %2194 = vmatpush3.bf16.msra.mxu0 %v2269_v53 }
0x15a0   :  { %2195 = vmatprep.subr.bf16.mxu0 %v2369_v0 }
0x15a3   :  { %2196 = vmatpush3.bf16.msra.mxu0 %v2270_v38 }
0x15fe   :  { %v1606_v30 = vpop.permute.xlu0 %1605 }
0x15ff   :  { %v1608_v31 = vmul.f32 %v2358_v28, %v1606_v30 }
0x1601   :  { %1610 = vrot.lane.b32.xlu1 %v1608_v31, %s2372_s4 }
0x1673   :  { %v1611_v4 = vpop.permute.xlu1 %1610 }
0x1674   :  { %v2889_v34 = vadd.f32 %v1611_v4, %v1603_v33 }
0x1676   :  { %2359 = vtanh.f32 %v2889_v34 }
0x1683   :  { %v2360_v36 = vpop.eup %2359 }
0x1684   :  { %1616 = vrot.lane.b32.xlu0 %v2360_v36, %s2372_s4 }
0x1688   :  { %1624 = vrot.lane.b32.xlu0 %v2848_v61, %s2374_s13  ;;  %v2272_v61 = vld [vmem:[%s2956_s10] sm:$0xff]  }
0x1689   :  { %2204 = vmatpush3.bf16.msra.mxu1 %v2272_v61 }
0x16f6   :  { %v1617_v39 = vpop.permute.xlu0 %1616 }
0x16f7   :  { %v1619_v40 = vmul.f32 %v2358_v28, %v1617_v39 }
0x16f9   :  { %v1620_v41 = vpack.c.bf16 %v1619_v40, %v1619_v40 }
0x16fa   :  { %v1625_v42 = vpop.permute.xlu0 %1624 }
0x16fb   :  { %1622 = vrot.lane.b32.xlu1 %v1620_v41, %s2373_s1 }
0x176d   :  { %v1623_v43 = vpop.permute.xlu1 %1622 }
0x176e   :  { %v1628_v44 = vsel %vm156_vm2, %v1623_v43, %v1625_v42 }
0x176f   :  { %2198 = vmatmul.mubr.msk.bf16.vlgmr.msra.gmra.mxu0 %vm87_vm1, %v1628_v44 }
0x182f   :  { %v1697_v37 = vpop.f32.mrf.mxu0 }
0x1830   :  { %v1698_v45 = vadd.f32 %v2603_v35, %v1697_v37 }
0x1831   :  { %v2199_v46 = vpop.f32.mrf.mxu0 }
0x1832   :  { %2361 = vtanh.f32 %v1698_v45  ;;  %v1934_v20 = vmul.f32 -1.442695, %v1698_v45 }
0x1833   :  { %v1700_v47 = vpop.f32.mrf.mxu0 }
0x1834   :  { %2363 = vpow2.f32 %v1934_v20 }
0x1835   :  { %v2200_v49 = vpop.f32.mrf.mxu0 }
0x183f   :  { %v2362_v50 = vpop.eup %2361 }
0x1840   :  { %1712 = vrot.lane.b32.xlu1 %v2362_v50, %s2372_s4 }
0x1841   :  { %v2364_v51 = vpop.eup %2363 }
0x1842   :  { %v1706_v54 = vadd.f32 1.0, %v2364_v51 }
0x1844   :  { %2365 = vrcp.f32 %v1706_v54 }
0x1851   :  { %v2366_v55 = vpop.eup %2365 }
0x1852   :  { %v1710_v29 = vmul.f32 %v2366_v55, %v2831_v52 }
0x18b2   :  { %v1713_v57 = vpop.permute.xlu1 %1712 }
0x18b3   :  { %v1715_v58 = vmul.f32 %v2366_v55, %v1713_v57 }
0x18b5   :  { %1717 = vrot.lane.b32.xlu0 %v1715_v58, %s2372_s4 }
0x1927   :  { %v1718_v35 = vpop.permute.xlu0 %1717 }
0x1928   :  { %v1720_v32 = vadd.f32 %v1718_v35, %v1710_v29 }
0x192a   :  { %2367 = vtanh.f32 %v1720_v32 }
0x1937   :  { %v2368_v59 = vpop.eup %2367 }
0x1938   :  { %1723 = vrot.lane.b32.xlu1 %v2368_v59, %s2372_s4 }
0x193c   :  { %1801 = vrot.lane.b32.xlu1 %v2854_v1, %s2373_s1 }
0x1940   :  { %1813 = vrot.lane.b32.xlu1 %v1620_v41, %s2373_s1 }
0x19aa   :  { %v1724_v52 = vpop.permute.xlu1 %1723 }
0x19ab   :  { %v1726_v62 = vmul.f32 %v2366_v55, %v1724_v52 }
0x19ad   :  { %v1727_v63 = vpack.c.bf16 %v1726_v62, %v1726_v62 }
0x19ae   :  { %v1802_v2 = vpop.permute.xlu1 %1801 }
0x19af   :  { %1805 = vst.msk [vmem:[#allocation3] sm:$0xf] %vm269_vm3, %v1802_v2  ;;  %1824 = vrot.lane.b32.xlu1 %v1727_v63, %s2373_s1  ;;  %1740 = vrot.lane.b32.xlu0 %v1727_v63, %s2373_s1 }
0x19b2   :  { %v1814_v1 = vpop.permute.xlu1 %1813 }
0x19b3   :  { %1816 = vst.msk [vmem:[#allocation3 + $0x4] sm:$0xf] %vm269_vm3, %v1814_v1  ;;  %1807 = vrot.lane.b32.xlu0 %v2835_v56, %s2374_s13 }
0x19b7   :  { %1818 = vrot.lane.b32.xlu0 %v2889_v34, %s2374_s13 }
0x19bb   :  { %1829 = vrot.lane.b32.xlu0 %v1720_v32, %s2374_s13 }
0x1a21   :  { %v1741_v0 = vpop.permute.xlu0 %1740  ;;  %v1825_v5 = vpop.permute.xlu1 %1824 }
0x1a22   :  { %1827 = vst.msk [vmem:[#allocation3 + $0x8] sm:$0xf] %vm269_vm3, %v1825_v5  ;;  %2206 = vmatmul.mubr.msk.bf16.vlgmr.msra.gmra.mxu1 %vm156_vm2, %v1741_v0 }
0x1a25   :  { %v1808_v6 = vpop.permute.xlu0 %1807 }
0x1a26   :  { %1810 = vst.msk [vmem:[#allocation4] sm:$0xff] %vm156_vm2, %v1808_v6 }
0x1a29   :  { %v1819_v8 = vpop.permute.xlu0 %1818 }
0x1a2a   :  { %1821 = vst.msk [vmem:[#allocation4 + $0x8] sm:$0xff] %vm156_vm2, %v1819_v8 }
0x1a2d   :  { %v1830_v9 = vpop.permute.xlu0 %1829 }
0x1a2e   :  { %1832 = vst.msk [vmem:[#allocation4 + $0x10] sm:$0xff] %vm156_vm2, %v1830_v9 }
0x1ae2   :  { %v1791_v56 = vpop.f32.mrf.mxu1 }
0x1ae3   :  { %v1792_v10 = vadd.f32 %v2665_v26, %v1791_v56 }
0x1ae4   :  { %v2207_v11 = vpop.f32.mrf.mxu1 }
0x1ae5   :  { %1939 = vst [vmem:[%s2958_s12 + $0x18] sm:$0xff] %v1792_v10 }
0x1ae6   :  { %v1794_v12 = vpop.f32.mrf.mxu1 }
0x1ae8   :  { %v2208_v48 = vpop.f32.mrf.mxu1 }

</bundles_post_ra>
